<compile_context>
chip_gen: v5e
topology: v5e:2x2
jax: 0.10.0
libtpu: 0.0.40
codegen_flags: <defaults>
</compile_context>

<pallas_src>
import functools

import jax
import jax.numpy as jnp
from jax.experimental import pallas as pl
from jax.experimental.pallas import tpu as pltpu

C = 64  # fixed by the module definition (Conv1d(64, 64, ...))


def _basic_block_kernel(x_ref, w1_ref, b1_ref, alpha_ref, w2_ref, b2_ref,
                        out_ref, col_ref, h_ref, *, nb, k, pad_l, length):
    """One grid step processes `nb` batch elements.

    x_ref    : (nb, C, L)      unpadded input block (f32, VMEM)
    w1_ref   : (C, K*C)        conv1 weights, BN1 scale folded in (bf16)
    b1_ref   : (C, 1)          BN1 shift (conv1 bias folded in, f32)
    alpha_ref: (1,)            PReLU slope (f32, SMEM)
    w2_ref   : (C, K*C)        conv2 weights, BN2 scale folded in (bf16)
    b2_ref   : (C, 1)          BN2 shift (conv2 bias folded in, f32)
    out_ref  : (nb, C, L)      output block (f32)
    col_ref  : (K*C, nb*L)     im2col scratch (bf16), reused for both convs
    h_ref    : (C, nb*L)       conv1 activation scratch (bf16)
    """
    L = length
    cdt = col_ref.dtype

    # Static halo geometry per tap: which output columns of tap-block t are
    # 'same' padding (always zero) vs. real data.
    halos = []
    for t in range(k):
        lo = max(0, pad_l - t)          # first valid output column for tap t
        hi = min(L, L + pad_l - t)      # one-past-last valid output column
        halos.append((lo, hi))

    # Zero only the (few) halo columns, per batch element.  Done every step
    # (not program_id==0) so the kernel stays correct under megacore grid
    # partitioning; data columns are always overwritten below, so the zeros
    # remain valid for BOTH convs.
    for b in range(nb):
        c0 = b * L
        for t, (lo, hi) in enumerate(halos):
            r0 = t * C
            if lo > 0:
                col_ref[r0:r0 + C, c0:c0 + lo] = jnp.zeros((C, lo), cdt)
            if hi < L:
                col_ref[r0:r0 + C, c0 + hi:c0 + L] = jnp.zeros((C, L - hi), cdt)

    alpha = alpha_ref[0]  # scalar, read on the scalar path (SMEM)

    # ---- conv1: im2col of the (implicitly zero-padded) input, all nb elems --
    for b in range(nb):
        c0 = b * L
        for t, (lo, hi) in enumerate(halos):
            r0 = t * C
            src = lo + t - pad_l        # start column in the unpadded input
            col_ref[r0:r0 + C, c0 + lo:c0 + hi] = (
                x_ref[b, :, src:src + (hi - lo)].astype(cdt))

    # Single fused MXU matmul for conv1: (C, K*C) @ (K*C, nb*L), f32 acc.
    h = jnp.dot(w1_ref[...], col_ref[...],
                preferred_element_type=jnp.float32)             # (C, nb*L)
    h = h + b1_ref[...]                                         # folded BN1
    h = jnp.where(h > 0, h, alpha * h)                          # PReLU
    h_ref[...] = h.astype(h_ref.dtype)

    # ---- conv2: rebuild im2col from the staged intermediate activation ------
    # (halo columns are still zero; only data columns are rewritten)
    for b in range(nb):
        c0 = b * L
        for t, (lo, hi) in enumerate(halos):
            r0 = t * C
            src = lo + t - pad_l
            col_ref[r0:r0 + C, c0 + lo:c0 + hi] = (
                h_ref[:, c0 + src:c0 + src + (hi - lo)])

    y = jnp.dot(w2_ref[...], col_ref[...],
                preferred_element_type=jnp.float32)             # (C, nb*L)
    y = y + b2_ref[...]                                         # folded BN2

    # Residual add + writeback (lane-contiguous slices per batch element).
    for b in range(nb):
        c0 = b * L
        out_ref[b] = (y[:, c0:c0 + L] + x_ref[b]).astype(out_ref.dtype)


def _pick_nb(N, L):
    """Batch elements per grid step.

    Keep each (nb, C, L) f32 block <= ~1 MiB so double-buffered in/out blocks
    plus the (K*C, nb*L) im2col scratch stay well inside the scoped-VMEM
    budget (v7x has only 64 MiB physical VMEM), and keep >= 2 grid steps so
    both TensorCores on 2-TC chips get work.
    """
    vmem_cap = max(1, (1024 * 1024) // (C * L * 4))
    cap = max(1, min(N, 8, vmem_cap))
    divisors = [d for d in range(1, cap + 1) if N % d == 0]
    multi_step = [d for d in divisors if N // d >= 2]
    return max(multi_step) if multi_step else max(divisors)


def basic_block_forward(x, params, *, nb=None, eps=1e-5):
    """x: (N, C=64, L) float32  ->  (N, C, L) float32."""
    N, Cin, L = x.shape
    assert Cin == C
    w1 = params["w1"]  # (Cout, Cin, K)
    w2 = params["w2"]
    K = w1.shape[-1]

    # PyTorch padding='same' (stride=1, dilation=1): total = K-1,
    # left = total // 2, right = total - left (handled via halo geometry).
    pad_l = (K - 1) // 2

    # Fold BN scales (and conv biases) into weights / shifts.
    s1 = params["gamma1"] / jnp.sqrt(params["var1"] + eps)
    s2 = params["gamma2"] / jnp.sqrt(params["var2"] + eps)
    shift1 = (params["beta1"] + (params["bias1"] - params["mean1"]) * s1)
    shift2 = (params["beta2"] + (params["bias2"] - params["mean2"]) * s2)
    shift1 = shift1.reshape(C, 1).astype(jnp.float32)
    shift2 = shift2.reshape(C, 1).astype(jnp.float32)

    # (Cout, Cin, K) -> (Cout, K, Cin) -> (Cout, K*Cin); scale along Cout.
    w1f = (s1[:, None, None] * jnp.transpose(w1, (0, 2, 1))).reshape(C, K * C)
    w2f = (s2[:, None, None] * jnp.transpose(w2, (0, 2, 1))).reshape(C, K * C)
    w1f = w1f.astype(jnp.bfloat16)
    w2f = w2f.astype(jnp.bfloat16)
    alpha = params["alpha"].reshape(1).astype(jnp.float32)

    if nb is None:
        nb = _pick_nb(N, L)
    assert N % nb == 0
    grid = (N // nb,)

    kernel = functools.partial(_basic_block_kernel, nb=nb, k=K,
                               pad_l=pad_l, length=L)

    const2 = lambda n: (0, 0)

    return pl.pallas_call(
        kernel,
        out_shape=jax.ShapeDtypeStruct((N, C, L), x.dtype),
        grid_spec=pltpu.PrefetchScalarGridSpec(
            num_scalar_prefetch=0,
            grid=grid,
            in_specs=[
                pl.BlockSpec((nb, C, L), lambda n: (n, 0, 0)),       # x (unpadded)
                pl.BlockSpec((C, K * C), const2),                    # w1 (folded, bf16)
                pl.BlockSpec((C, 1), const2),                        # shift1
                pl.BlockSpec(memory_space=pltpu.MemorySpace.SMEM),   # alpha (scalar)
                pl.BlockSpec((C, K * C), const2),                    # w2 (folded, bf16)
                pl.BlockSpec((C, 1), const2),                        # shift2
            ],
            out_specs=pl.BlockSpec((nb, C, L), lambda n: (n, 0, 0)),
            scratch_shapes=[
                pltpu.VMEM((K * C, nb * L), jnp.bfloat16),           # im2col
                pltpu.VMEM((C, nb * L), jnp.bfloat16),               # conv1 act
            ],
        ),
        compiler_params=pltpu.CompilerParams(
            dimension_semantics=("parallel",),
        ),
    )(x, w1f, shift1, alpha, w2f, shift2)


def reference_forward(x, params, eps=1e-5):
    """Pure-JAX reference matching PyTorch eval-mode semantics."""
    w1, w2 = params["w1"], params["w2"]
    K = w1.shape[-1]
    total = K - 1
    pad_l = total // 2
    pad_r = total - pad_l

    def conv(h, w, bias):
        y = jax.lax.conv_general_dilated(
            h, w, window_strides=(1,), padding=[(pad_l, pad_r)],
            dimension_numbers=("NCH", "OIH", "NCH"))
        return y + bias.reshape(1, C, 1)

    def bn(h, gamma, beta, mean, var):
        g = gamma.reshape(1, C, 1)
        b = beta.reshape(1, C, 1)
        m = mean.reshape(1, C, 1)
        v = var.reshape(1, C, 1)
        return (h - m) / jnp.sqrt(v + eps) * g + b

    h = conv(x, w1, params["bias1"])
    h = bn(h, params["gamma1"], params["beta1"], params["mean1"], params["var1"])
    a = params["alpha"].reshape(())
    h = jnp.where(h > 0, h, a * h)
    h = conv(h, w2, params["bias2"])
    h = bn(h, params["gamma2"], params["beta2"], params["mean2"], params["var2"])
    return h + x


def make_params(key, kernelsize):
    ks = jax.random.split(key, 12)
    f32 = jnp.float32
    return {
        "w1": 0.05 * jax.random.normal(ks[0], (C, C, kernelsize), f32),
        "w2": 0.05 * jax.random.normal(ks[1], (C, C, kernelsize), f32),
        "bias1": 0.05 * jax.random.normal(ks[10], (C,), f32),
        "bias2": 0.05 * jax.random.normal(ks[11], (C,), f32),
        "gamma1": 1.0 + 0.1 * jax.random.normal(ks[2], (C,), f32),
        "beta1": 0.1 * jax.random.normal(ks[3], (C,), f32),
        "mean1": 0.1 * jax.random.normal(ks[4], (C,), f32),
        "var1": 0.5 + jnp.abs(jax.random.normal(ks[5], (C,), f32)),
        "gamma2": 1.0 + 0.1 * jax.random.normal(ks[6], (C,), f32),
        "beta2": 0.1 * jax.random.normal(ks[7], (C,), f32),
        "mean2": 0.1 * jax.random.normal(ks[8], (C,), f32),
        "var2": 0.5 + jnp.abs(jax.random.normal(ks[9], (C,), f32)),
        "alpha": jnp.asarray([0.25], f32),  # PReLU default init
    }


if __name__ == "__main__":
    key = jax.random.PRNGKey(0)
    kx, kp = jax.random.split(key)

    N, L, kernelsize = 4, 256, 3   # nb=2 per grid step, 2 grid steps
    x = jax.random.normal(kx, (N, C, L), jnp.float32)
    params = make_params(kp, kernelsize)

    out = basic_block_forward(x, params)
    out = jax.block_until_ready(out)

    ref = jax.block_until_ready(reference_forward(x, params))
    assert out.shape == (N, C, L)
    max_err = float(jnp.max(jnp.abs(out - ref)))
    # bf16 MXU inputs (weights + im2col + intermediate act) with f32
    # accumulation -> relaxed tolerance.
    ok = bool(jnp.allclose(out, ref, atol=3e-2, rtol=3e-2))
    assert ok, f"mismatch vs reference: max_err={max_err}"

    print("KERNEL_OK")
</pallas_src>

<mosaic_0001>
module attributes {stable_mosaic.version = 11 : i64} {
  func.func @_basic_block_kernel(%arg0: i32, %arg1: memref<2x64x256xf32, #tpu.memory_space<vmem>>, %arg2: memref<64x192xbf16, #tpu.memory_space<vmem>>, %arg3: memref<64x1xf32, #tpu.memory_space<vmem>>, %arg4: memref<1xf32, #tpu.memory_space<smem>>, %arg5: memref<64x192xbf16, #tpu.memory_space<vmem>>, %arg6: memref<64x1xf32, #tpu.memory_space<vmem>>, %arg7: memref<2x64x256xf32, #tpu.memory_space<vmem>>, %arg8: memref<192x512xbf16, #tpu.memory_space<vmem>>, %arg9: memref<64x512xbf16, #tpu.memory_space<vmem>>) attributes {dimension_semantics = [#tpu.dimension_semantics<parallel>], iteration_bounds = array<i64: 2>, scalar_prefetch = 0 : i64, scratch_operands = 2 : i64, tpu.core_type = #tpu.core_type<tc>, window_params = [{transform_indices = @transform_0, window_bounds = array<i64: 2, 64, 256>}, {pipeline_mode = #tpu.pipeline_mode<synchronous>, transform_indices = @transform_1, window_bounds = array<i64: 64, 192>}, {pipeline_mode = #tpu.pipeline_mode<synchronous>, transform_indices = @transform_2, window_bounds = array<i64: 64, 1>}, {transform_indices = @transform_3, window_bounds = array<i64: 1>}, {pipeline_mode = #tpu.pipeline_mode<synchronous>, transform_indices = @transform_4, window_bounds = array<i64: 64, 192>}, {pipeline_mode = #tpu.pipeline_mode<synchronous>, transform_indices = @transform_5, window_bounds = array<i64: 64, 1>}, {transform_indices = @transform_6, window_bounds = array<i64: 2, 64, 256>}]} {
    %cst = arith.constant 0.000000e+00 : bf16
    %0 = vector.broadcast %cst : bf16 to vector<64x1xbf16>
    %c0 = arith.constant 0 : index
    %c0_0 = arith.constant 0 : index
    %1 = vector.load %arg8[%c0, %c0_0] : memref<192x512xbf16, #tpu.memory_space<vmem>>, vector<64x1xbf16>
    tpu.vector_store %arg8[%c0, %c0_0], %0 {strides = array<i32>} : memref<192x512xbf16, #tpu.memory_space<vmem>>, vector<64x1xbf16>,
    %cst_1 = arith.constant 0.000000e+00 : bf16
    %2 = vector.broadcast %cst_1 : bf16 to vector<64x1xbf16>
    %c128 = arith.constant 128 : index
    %c255 = arith.constant 255 : index
    %3 = vector.load %arg8[%c128, %c255] : memref<192x512xbf16, #tpu.memory_space<vmem>>, vector<64x1xbf16>
    tpu.vector_store %arg8[%c128, %c255], %2 {strides = array<i32>} : memref<192x512xbf16, #tpu.memory_space<vmem>>, vector<64x1xbf16>,
    %cst_2 = arith.constant 0.000000e+00 : bf16
    %4 = vector.broadcast %cst_2 : bf16 to vector<64x1xbf16>
    %c0_3 = arith.constant 0 : index
    %c256 = arith.constant 256 : index
    %5 = vector.load %arg8[%c0_3, %c256] : memref<192x512xbf16, #tpu.memory_space<vmem>>, vector<64x1xbf16>
    tpu.vector_store %arg8[%c0_3, %c256], %4 {strides = array<i32>} : memref<192x512xbf16, #tpu.memory_space<vmem>>, vector<64x1xbf16>,
    %cst_4 = arith.constant 0.000000e+00 : bf16
    %6 = vector.broadcast %cst_4 : bf16 to vector<64x1xbf16>
    %c128_5 = arith.constant 128 : index
    %c511 = arith.constant 511 : index
    %7 = vector.load %arg8[%c128_5, %c511] : memref<192x512xbf16, #tpu.memory_space<vmem>>, vector<64x1xbf16>
    tpu.vector_store %arg8[%c128_5, %c511], %6 {strides = array<i32>} : memref<192x512xbf16, #tpu.memory_space<vmem>>, vector<64x1xbf16>,
    %c0_6 = arith.constant 0 : index
    %8 = memref.load %arg4[%c0_6] : memref<1xf32, #tpu.memory_space<smem>>
    %c0_7 = arith.constant 0 : index
    %c0_8 = arith.constant 0 : index
    %c0_9 = arith.constant 0 : index
    %9 = vector.load %arg1[%c0_7, %c0_8, %c0_9] : memref<2x64x256xf32, #tpu.memory_space<vmem>>, vector<1x64x255xf32>
    %10 = vector.shape_cast %9 : vector<1x64x255xf32> to vector<64x255xf32>
    %11 = arith.truncf %10 : vector<64x255xf32> to vector<64x255xbf16>
    %c0_10 = arith.constant 0 : index
    %c1 = arith.constant 1 : index
    %12 = vector.load %arg8[%c0_10, %c1] : memref<192x512xbf16, #tpu.memory_space<vmem>>, vector<64x255xbf16>
    tpu.vector_store %arg8[%c0_10, %c1], %11 {strides = array<i32>} : memref<192x512xbf16, #tpu.memory_space<vmem>>, vector<64x255xbf16>,
    %c0_11 = arith.constant 0 : index
    %c0_12 = arith.constant 0 : index
    %c0_13 = arith.constant 0 : index
    %13 = vector.load %arg1[%c0_11, %c0_12, %c0_13] : memref<2x64x256xf32, #tpu.memory_space<vmem>>, vector<1x64x256xf32>
    %14 = vector.shape_cast %13 : vector<1x64x256xf32> to vector<64x256xf32>
    %15 = arith.truncf %14 : vector<64x256xf32> to vector<64x256xbf16>
    %c64 = arith.constant 64 : index
    %c0_14 = arith.constant 0 : index
    %16 = vector.load %arg8[%c64, %c0_14] : memref<192x512xbf16, #tpu.memory_space<vmem>>, vector<64x256xbf16>
    tpu.vector_store %arg8[%c64, %c0_14], %15 {strides = array<i32>} : memref<192x512xbf16, #tpu.memory_space<vmem>>, vector<64x256xbf16>,
    %c0_15 = arith.constant 0 : index
    %c0_16 = arith.constant 0 : index
    %c1_17 = arith.constant 1 : index
    %17 = vector.load %arg1[%c0_15, %c0_16, %c1_17] : memref<2x64x256xf32, #tpu.memory_space<vmem>>, vector<1x64x255xf32>
    %18 = vector.shape_cast %17 : vector<1x64x255xf32> to vector<64x255xf32>
    %19 = arith.truncf %18 : vector<64x255xf32> to vector<64x255xbf16>
    %c128_18 = arith.constant 128 : index
    %c0_19 = arith.constant 0 : index
    %20 = vector.load %arg8[%c128_18, %c0_19] : memref<192x512xbf16, #tpu.memory_space<vmem>>, vector<64x255xbf16>
    tpu.vector_store %arg8[%c128_18, %c0_19], %19 {strides = array<i32>} : memref<192x512xbf16, #tpu.memory_space<vmem>>, vector<64x255xbf16>,
    %c1_20 = arith.constant 1 : index
    %c0_21 = arith.constant 0 : index
    %c0_22 = arith.constant 0 : index
    %21 = vector.load %arg1[%c1_20, %c0_21, %c0_22] : memref<2x64x256xf32, #tpu.memory_space<vmem>>, vector<1x64x255xf32>
    %22 = vector.shape_cast %21 : vector<1x64x255xf32> to vector<64x255xf32>
    %23 = arith.truncf %22 : vector<64x255xf32> to vector<64x255xbf16>
    %c0_23 = arith.constant 0 : index
    %c257 = arith.constant 257 : index
    %24 = vector.load %arg8[%c0_23, %c257] : memref<192x512xbf16, #tpu.memory_space<vmem>>, vector<64x255xbf16>
    tpu.vector_store %arg8[%c0_23, %c257], %23 {strides = array<i32>} : memref<192x512xbf16, #tpu.memory_space<vmem>>, vector<64x255xbf16>,
    %c1_24 = arith.constant 1 : index
    %c0_25 = arith.constant 0 : index
    %c0_26 = arith.constant 0 : index
    %25 = vector.load %arg1[%c1_24, %c0_25, %c0_26] : memref<2x64x256xf32, #tpu.memory_space<vmem>>, vector<1x64x256xf32>
    %26 = vector.shape_cast %25 : vector<1x64x256xf32> to vector<64x256xf32>
    %27 = arith.truncf %26 : vector<64x256xf32> to vector<64x256xbf16>
    %c64_27 = arith.constant 64 : index
    %c256_28 = arith.constant 256 : index
    %28 = vector.load %arg8[%c64_27, %c256_28] : memref<192x512xbf16, #tpu.memory_space<vmem>>, vector<64x256xbf16>
    tpu.vector_store %arg8[%c64_27, %c256_28], %27 {strides = array<i32>} : memref<192x512xbf16, #tpu.memory_space<vmem>>, vector<64x256xbf16>,
    %c1_29 = arith.constant 1 : index
    %c0_30 = arith.constant 0 : index
    %c1_31 = arith.constant 1 : index
    %29 = vector.load %arg1[%c1_29, %c0_30, %c1_31] : memref<2x64x256xf32, #tpu.memory_space<vmem>>, vector<1x64x255xf32>
    %30 = vector.shape_cast %29 : vector<1x64x255xf32> to vector<64x255xf32>
    %31 = arith.truncf %30 : vector<64x255xf32> to vector<64x255xbf16>
    %c128_32 = arith.constant 128 : index
    %c256_33 = arith.constant 256 : index
    %32 = vector.load %arg8[%c128_32, %c256_33] : memref<192x512xbf16, #tpu.memory_space<vmem>>, vector<64x255xbf16>
    tpu.vector_store %arg8[%c128_32, %c256_33], %31 {strides = array<i32>} : memref<192x512xbf16, #tpu.memory_space<vmem>>, vector<64x255xbf16>,
    %c0_34 = arith.constant 0 : index
    %c0_35 = arith.constant 0 : index
    %33 = vector.load %arg2[%c0_34, %c0_35] : memref<64x192xbf16, #tpu.memory_space<vmem>>, vector<64x192xbf16>
    %c0_36 = arith.constant 0 : index
    %c0_37 = arith.constant 0 : index
    %34 = vector.load %arg8[%c0_36, %c0_37] : memref<192x512xbf16, #tpu.memory_space<vmem>>, vector<192x512xbf16>
    %cst_38 = arith.constant dense<0.000000e+00> : vector<64x512xf32>
    %35 = tpu.matmul %33, %34, %cst_38 {dimension_numbers = #tpu.dot_dimension_numbers<[1], [0], [0], [1], [0, 0, 1, 1], [], []>} : vector<64x192xbf16>, vector<192x512xbf16>, vector<64x512xf32> -> vector<64x512xf32>
    %c0_39 = arith.constant 0 : index
    %c0_40 = arith.constant 0 : index
    %36 = vector.load %arg3[%c0_39, %c0_40] : memref<64x1xf32, #tpu.memory_space<vmem>>, vector<64x1xf32>
    %37 = vector.broadcast %36 : vector<64x1xf32> to vector<64x512xf32>
    %38 = arith.addf %35, %37 : vector<64x512xf32>
    %cst_41 = arith.constant 0.000000e+00 : f32
    %39 = vector.broadcast %cst_41 : f32 to vector<64x512xf32>
    %40 = arith.cmpf ogt, %38, %39 : vector<64x512xf32>
    %41 = vector.broadcast %8 : f32 to vector<64x512xf32>
    %42 = arith.mulf %41, %38 : vector<64x512xf32>
    %43 = arith.select %40, %38, %42 : vector<64x512xi1>, vector<64x512xf32>
    %44 = arith.truncf %43 : vector<64x512xf32> to vector<64x512xbf16>
    %c0_42 = arith.constant 0 : index
    %c0_43 = arith.constant 0 : index
    %45 = vector.load %arg9[%c0_42, %c0_43] : memref<64x512xbf16, #tpu.memory_space<vmem>>, vector<64x512xbf16>
    tpu.vector_store %arg9[%c0_42, %c0_43], %44 {strides = array<i32>} : memref<64x512xbf16, #tpu.memory_space<vmem>>, vector<64x512xbf16>,
    %c0_44 = arith.constant 0 : index
    %c0_45 = arith.constant 0 : index
    %46 = vector.load %arg9[%c0_44, %c0_45] : memref<64x512xbf16, #tpu.memory_space<vmem>>, vector<64x255xbf16>
    %c0_46 = arith.constant 0 : index
    %c1_47 = arith.constant 1 : index
    %47 = vector.load %arg8[%c0_46, %c1_47] : memref<192x512xbf16, #tpu.memory_space<vmem>>, vector<64x255xbf16>
    tpu.vector_store %arg8[%c0_46, %c1_47], %46 {strides = array<i32>} : memref<192x512xbf16, #tpu.memory_space<vmem>>, vector<64x255xbf16>,
    %c0_48 = arith.constant 0 : index
    %c0_49 = arith.constant 0 : index
    %48 = vector.load %arg9[%c0_48, %c0_49] : memref<64x512xbf16, #tpu.memory_space<vmem>>, vector<64x256xbf16>
    %c64_50 = arith.constant 64 : index
    %c0_51 = arith.constant 0 : index
    %49 = vector.load %arg8[%c64_50, %c0_51] : memref<192x512xbf16, #tpu.memory_space<vmem>>, vector<64x256xbf16>
    tpu.vector_store %arg8[%c64_50, %c0_51], %48 {strides = array<i32>} : memref<192x512xbf16, #tpu.memory_space<vmem>>, vector<64x256xbf16>,
    %c0_52 = arith.constant 0 : index
    %c1_53 = arith.constant 1 : index
    %50 = vector.load %arg9[%c0_52, %c1_53] : memref<64x512xbf16, #tpu.memory_space<vmem>>, vector<64x255xbf16>
    %c128_54 = arith.constant 128 : index
    %c0_55 = arith.constant 0 : index
    %51 = vector.load %arg8[%c128_54, %c0_55] : memref<192x512xbf16, #tpu.memory_space<vmem>>, vector<64x255xbf16>
    tpu.vector_store %arg8[%c128_54, %c0_55], %50 {strides = array<i32>} : memref<192x512xbf16, #tpu.memory_space<vmem>>, vector<64x255xbf16>,
    %c0_56 = arith.constant 0 : index
    %c256_57 = arith.constant 256 : index
    %52 = vector.load %arg9[%c0_56, %c256_57] : memref<64x512xbf16, #tpu.memory_space<vmem>>, vector<64x255xbf16>
    %c0_58 = arith.constant 0 : index
    %c257_59 = arith.constant 257 : index
    %53 = vector.load %arg8[%c0_58, %c257_59] : memref<192x512xbf16, #tpu.memory_space<vmem>>, vector<64x255xbf16>
    tpu.vector_store %arg8[%c0_58, %c257_59], %52 {strides = array<i32>} : memref<192x512xbf16, #tpu.memory_space<vmem>>, vector<64x255xbf16>,
    %c0_60 = arith.constant 0 : index
    %c256_61 = arith.constant 256 : index
    %54 = vector.load %arg9[%c0_60, %c256_61] : memref<64x512xbf16, #tpu.memory_space<vmem>>, vector<64x256xbf16>
    %c64_62 = arith.constant 64 : index
    %c256_63 = arith.constant 256 : index
    %55 = vector.load %arg8[%c64_62, %c256_63] : memref<192x512xbf16, #tpu.memory_space<vmem>>, vector<64x256xbf16>
    tpu.vector_store %arg8[%c64_62, %c256_63], %54 {strides = array<i32>} : memref<192x512xbf16, #tpu.memory_space<vmem>>, vector<64x256xbf16>,
    %c0_64 = arith.constant 0 : index
    %c257_65 = arith.constant 257 : index
    %56 = vector.load %arg9[%c0_64, %c257_65] : memref<64x512xbf16, #tpu.memory_space<vmem>>, vector<64x255xbf16>
    %c128_66 = arith.constant 128 : index
    %c256_67 = arith.constant 256 : index
    %57 = vector.load %arg8[%c128_66, %c256_67] : memref<192x512xbf16, #tpu.memory_space<vmem>>, vector<64x255xbf16>
    tpu.vector_store %arg8[%c128_66, %c256_67], %56 {strides = array<i32>} : memref<192x512xbf16, #tpu.memory_space<vmem>>, vector<64x255xbf16>,
    %c0_68 = arith.constant 0 : index
    %c0_69 = arith.constant 0 : index
    %58 = vector.load %arg5[%c0_68, %c0_69] : memref<64x192xbf16, #tpu.memory_space<vmem>>, vector<64x192xbf16>
    %c0_70 = arith.constant 0 : index
    %c0_71 = arith.constant 0 : index
    %59 = vector.load %arg8[%c0_70, %c0_71] : memref<192x512xbf16, #tpu.memory_space<vmem>>, vector<192x512xbf16>
    %cst_72 = arith.constant dense<0.000000e+00> : vector<64x512xf32>
    %60 = tpu.matmul %58, %59, %cst_72 {dimension_numbers = #tpu.dot_dimension_numbers<[1], [0], [0], [1], [0, 0, 1, 1], [], []>} : vector<64x192xbf16>, vector<192x512xbf16>, vector<64x512xf32> -> vector<64x512xf32>
    %c0_73 = arith.constant 0 : index
    %c0_74 = arith.constant 0 : index
    %61 = vector.load %arg6[%c0_73, %c0_74] : memref<64x1xf32, #tpu.memory_space<vmem>>, vector<64x1xf32>
    %62 = vector.broadcast %61 : vector<64x1xf32> to vector<64x512xf32>
    %63 = arith.addf %60, %62 : vector<64x512xf32>
    %64 = vector.extract_strided_slice %63 {offsets = [0, 0], sizes = [64, 256], strides = [1, 1]} : vector<64x512xf32> to vector<64x256xf32>
    %c0_75 = arith.constant 0 : index
    %c0_76 = arith.constant 0 : index
    %c0_77 = arith.constant 0 : index
    %65 = vector.load %arg1[%c0_75, %c0_76, %c0_77] : memref<2x64x256xf32, #tpu.memory_space<vmem>>, vector<1x64x256xf32>
    %66 = vector.shape_cast %65 : vector<1x64x256xf32> to vector<64x256xf32>
    %67 = arith.addf %64, %66 : vector<64x256xf32>
    %c0_78 = arith.constant 0 : index
    %c0_79 = arith.constant 0 : index
    %c0_80 = arith.constant 0 : index
    %68 = vector.load %arg7[%c0_78, %c0_79, %c0_80] : memref<2x64x256xf32, #tpu.memory_space<vmem>>, vector<1x64x256xf32>
    %69 = vector.shape_cast %68 : vector<1x64x256xf32> to vector<64x256xf32>
    %70 = vector.shape_cast %67 : vector<64x256xf32> to vector<1x64x256xf32>
    tpu.vector_store %arg7[%c0_78, %c0_79, %c0_80], %70 {strides = array<i32>} : memref<2x64x256xf32, #tpu.memory_space<vmem>>, vector<1x64x256xf32>,
    %71 = vector.extract_strided_slice %63 {offsets = [0, 256], sizes = [64, 256], strides = [1, 1]} : vector<64x512xf32> to vector<64x256xf32>
    %c1_81 = arith.constant 1 : index
    %c0_82 = arith.constant 0 : index
    %c0_83 = arith.constant 0 : index
    %72 = vector.load %arg1[%c1_81, %c0_82, %c0_83] : memref<2x64x256xf32, #tpu.memory_space<vmem>>, vector<1x64x256xf32>
    %73 = vector.shape_cast %72 : vector<1x64x256xf32> to vector<64x256xf32>
    %74 = arith.addf %71, %73 : vector<64x256xf32>
    %c1_84 = arith.constant 1 : index
    %c0_85 = arith.constant 0 : index
    %c0_86 = arith.constant 0 : index
    %75 = vector.load %arg7[%c1_84, %c0_85, %c0_86] : memref<2x64x256xf32, #tpu.memory_space<vmem>>, vector<1x64x256xf32>
    %76 = vector.shape_cast %75 : vector<1x64x256xf32> to vector<64x256xf32>
    %77 = vector.shape_cast %74 : vector<64x256xf32> to vector<1x64x256xf32>
    tpu.vector_store %arg7[%c1_84, %c0_85, %c0_86], %77 {strides = array<i32>} : memref<2x64x256xf32, #tpu.memory_space<vmem>>, vector<1x64x256xf32>,
    return
  }
  func.func @transform_0(%arg0: i32) -> (i32, i32, i32) {
    %c0_i32 = arith.constant 0 : i32
    %c0_i32_0 = arith.constant 0 : i32
    %c0_i32_1 = arith.constant 0 : i32
    return %arg0, %c0_i32, %c0_i32_0 : i32, i32, i32
  }
  func.func @transform_1(%arg0: i32) -> (i32, i32) {
    %c0_i32 = arith.constant 0 : i32
    %c0_i32_0 = arith.constant 0 : i32
    %c0_i32_1 = arith.constant 0 : i32
    return %c0_i32, %c0_i32_0 : i32, i32
  }
  func.func @transform_2(%arg0: i32) -> (i32, i32) {
    %c0_i32 = arith.constant 0 : i32
    %c0_i32_0 = arith.constant 0 : i32
    %c0_i32_1 = arith.constant 0 : i32
    return %c0_i32, %c0_i32_0 : i32, i32
  }
  func.func @transform_3(%arg0: i32) -> i32 {
    %c0_i32 = arith.constant 0 : i32
    %c0_i32_0 = arith.constant 0 : i32
    return %c0_i32 : i32
  }
  func.func @transform_4(%arg0: i32) -> (i32, i32) {
    %c0_i32 = arith.constant 0 : i32
    %c0_i32_0 = arith.constant 0 : i32
    %c0_i32_1 = arith.constant 0 : i32
    return %c0_i32, %c0_i32_0 : i32, i32
  }
  func.func @transform_5(%arg0: i32) -> (i32, i32) {
    %c0_i32 = arith.constant 0 : i32
    %c0_i32_0 = arith.constant 0 : i32
    %c0_i32_1 = arith.constant 0 : i32
    return %c0_i32, %c0_i32_0 : i32, i32
  }
  func.func @transform_6(%arg0: i32) -> (i32, i32, i32) {
    %c0_i32 = arith.constant 0 : i32
    %c0_i32_0 = arith.constant 0 : i32
    %c0_i32_1 = arith.constant 0 : i32
    return %arg0, %c0_i32, %c0_i32_0 : i32, i32, i32
  }
}

</mosaic_0001>

<bundles_post_ra>
// kernel: tpu_custom_call.1
= control target key start
LH: loop header
LB: loop body
LE: loop exit
PB: predicated region body
PF: predicated region fallthrough
CT: control target
= control target key end

     0   :  { %s4396_s0 = inlined_call_operand.hbm [shape: f32[4,64,256], index: 0, kind: input, shape index: {}]   ;;  %s4397_s1 = inlined_call_operand.vmem [shape: bf16[64,192], index: 1, kind: input, shape index: {}]   ;;  %s4398_s2 = inlined_call_operand.vmem [shape: f32[64,1], index: 2, kind: input, shape index: {}]   ;;  %s4399_s3 = inlined_call_operand.<no memory space> [shape: f32[1], index: 3, kind: input, shape index: {}]   ;;  %s4400_s4 = inlined_call_operand.vmem [shape: bf16[64,192], index: 4, kind: input, shape index: {}]   ;;  %s4401_s5 = inlined_call_operand.vmem [shape: f32[64,1], index: 5, kind: input, shape index: {}]   ;;  %s4402_s6 = inlined_call_operand.hbm [shape: f32[4,64,256], index: 6, kind: output, shape index: {}]  }
   0x1   :  { %11 = sst [smem:[#allocation4]] %s4399_s3 }
   0x2   :  { %12 = vsyncpa [#allocation6], 0 }
   0x3   :  { %14 = vsyncpa [#allocation6 + $0x1], 0 }
   0x4   :  { %15 = vsyncpa [#allocation7], 0 }
   0x5   :  { %17 = vsyncpa [#allocation7 + $0x1], 0  ;;  %s3449_s23 = smov 0   ;;  %s3451_s24 = smov 0  }
   0x6   :  { %s3453_s25 = smov 0   ;;  %s3455_s26 = smov 0  }
   0x7 LB: > { %s3470_s3 = sadd.s32 4294967295, %s3402_s26   ;;  %s2558_s27 = sadd.s32 4294967294, %s3402_s26   ;;  %s3402_s26 = sphi %s3455_s26, %s4416_s26   ;;  %s3398_s25 = sphi %s3453_s25, %s4415_s25   ;;  %s3394_s24 = sphi %s3451_s24, %s4414_s24   ;;  %s3390_s23 = sphi %s3449_s23, %s4413_s23  }
   0x8   : > { %s3474_s28 = sadd.s32 1, %s3402_s26   ;;  %s30_s29 = sadd.s32 1, %s3398_s25 }
   0x9   : > { %s27_s30 = ssub.s32 %s3402_s26, %s3474_s28  ;;  %p37_p0 = scmp.ne.s32.totalorder %s3398_s25, %s3394_s24 }
   0xa   : > { %p28_p1 = scmp.eq.s32.totalorder %s27_s30, 0  ;;  %p38_p2 = scmp.eq.s32.totalorder %s3402_s26, 0 }
   0xb   : > { %p43_p3 = scmp.ne.s32.totalorder %s3394_s24, %s3390_s23  ;;  %p44_p4 = scmp.eq.s32.totalorder %s3470_s3, 0 }
   0xc   : > { %s3486_s7 = scalar_select %p28_p1, %s3398_s25, %s30_s29  }
   0xd   : > { %p3488_p5 = por %p38_p2, %p37_p0  ;;  %p3492_p6 = por %p44_p4, %p43_p3 }
   0xe   : > { %p172_p7 = scmp.eq.s32.totalorder %s3470_s3, 1  ;;  %p178_p8 = scmp.eq.s32.totalorder %s2558_s27, 1 }
   0xf   : > { %p3262_p10 = scmp.lt.s32.totalorder %s3402_s26, 2  ;;  %s213_s12 = sand.u32 1, %s3398_s25  }
  0x10   : > { %p3499_p11 = por %p172_p7, %p37_p0  ;;  %p3503_p12 = por %p178_p8, %p43_p3 }
  0x11   : > { %s3135_s13 = sshll.u32 %s3402_s26, 8  ;;  %s2561_s14 = sshll.u32 %s213_s12, 8 }
  0x12   : > { %s223_s17 = scalar_lea.hbm %s4396_s0, %s3135_s13  ;;  %s217_s19 = scalar_lea.vmem [#allocation5], %s2561_s14 }
  0x13   : > { %s224_s18 = sshll.u32 %s223_s17, 4  ;;  %s226_s20 = sshll.u32 %s217_s19, 4  ;;  %s225_s18 = int_to_ptr.hbm [resolvable:$true] %s224_s18  ;;  %s227_s20 = int_to_ptr.vmem [resolvable:$true] %s226_s20 }
  0x14   : > { %p3514_p13 = pnand %p3262_p10, %p3488_p5  ;;  %p2565_p0 = scmp.ge.s32.totalorder %s3402_s26, 1 }
  0x15   : > { %p234_p1 = scmp.lt.s32.totalorder %s3402_s26, 3  ;;  %s214_s22 = scalar_lea.sflag [#allocation6], %s213_s12 }
  0x16   : > { %s3306_s27 = sshra.s32 %s225_s18, 4  ;;  %p3310_p3 = pneg %p3514_p13  ;;  %s3307_s27 = int_to_ptr.hbm [resolvable:$true] %s3306_s27 }
  0x17   : > { %s3308_s29 = scalar_lea.hbm %s3307_s27, 256  ;;  %s3313_s8 = scalar_lea.hbm %s4396_s0, 512 }
  0x18   : > { %p3309_p2 = scmp.ne.s32.totalorder %s3307_s27, %s3308_s29  ;;  %p3314_p5 = scmp.lt.s32.totalorder %s3307_s27, %s4396_s0 }
  0x19   : > { %p3315_p8 = scmp.lt.s32.totalorder %s3313_s8, %s3308_s29 }
  0x1a   : > { %p3311_p4 = pnand %p3310_p3, %p3309_p2 }
  0x1b   : > { %p3316_p10 = por %p3315_p8, %p3314_p5 }
  0x1c   : > { %p3312_p7 = pneg %p3311_p4 }
  0x1e   : > { %p3317_p9 = pnand %p3316_p10, %p3312_p7 }
  0x20   : > { %3320 = shalt.err (!%p3317_p9)
}
  0x21   : > { %s3404_s12 = smov 256   ;;  %s3405_s16 = smov 16  }
  0x22   : > { %3257 = dma.hbm_to_vmem [thread:$0]  (!%p3514_p13), %s225_s18, 4096, %s227_s20, %s214_s22, %s3404_s12, %s3404_s12, %s3405_s16  }
  0x23   : > { %p235_p2 = pnand %p2565_p0, %p234_p1 }
  0x24   : > { %s3535_s17 = sand.u32 (!%p235_p2), 1, %s3394_s24  }
  0x25   : > { %238 = sbr.rel (%p235_p2) target bundleno = 821 (0x335), region = 44  ;;  %s2566_s19 = sshll.u32 (!%p235_p2), %s3535_s17, 8 }
  0x26   : > { %s241_s27 = scalar_lea.sflag (!%p235_p2), [#allocation6], %s3535_s17  ;;  %s3541_s29 = scalar_lea.vmem (!%p235_p2), [#allocation5], %s2566_s19 }
  0x2a   : > { %3381 = dma.done.wait (%p3492_p6), %s241_s27, 4096  }
  0x2b   : > { %3383 = vsyncadd (%p3492_p6), %s241_s27, 4294963200  ;;  %v440_v0 = vld [vmem:[%s3541_s29 + $0x60] sm:$0xff]  ;;  %v441_v1 = vld [vmem:[%s3541_s29 + $0x68] sm:$0xff]  ;;  %s3406_s9 = smov 127   ;;  %s3407_s18 = smov 1   ;;  %vm277_vm0 = vcmask 3072  }
  0x2c   : > { %v442_v2 = vld [vmem:[%s3541_s29 + $0x70] sm:$0xff]  ;;  %v450_v3 = vpack.c.bf16 %v441_v1, %v440_v0  ;;  %v443_v4 = vld [vmem:[%s3541_s29 + $0x78] sm:$0xff]  ;;  %v436_v8 = vld [vmem:[%s3541_s29 + $0x40] sm:$0xff]  ;;  %v3408_v48 = vmov 0   ;;  %vm286_vm1 = vcmask 1044472   ;;  %vm385_vm2 = vcmask 1043464  }
  0x2d   : > { %v438_v5 = vld [vmem:[%s3541_s29 + $0x50] sm:$0xff]  ;;  %v439_v6 = vld [vmem:[%s3541_s29 + $0x58] sm:$0xff]  ;;  %v451_v7 = vpack.c.bf16 %v443_v4, %v442_v2  ;;  %v437_v9 = vld [vmem:[%s3541_s29 + $0x48] sm:$0xff]  ;;  %282 = vst.msk [vmem:[#allocation2 + $0x40] sm:$0xf] %vm277_vm0, %v3408_v48  ;;  %3305 = vset.pattern.permute.xlu1 %v3408_v48  ;;  %3304 = vset.pattern.permute.xlu0 %v3408_v48  ;;  %vm386_vm3 = vcmask 1047556  }
  0x2e   : > { %v432_v10 = vld [vmem:[%s3541_s29 + $0x20] sm:$0xff]  ;;  %472 = vrot.lane.b32.xlu1 %v450_v3, %s3406_s9  ;;  %356 = vrot.lane.b32.xlu0 %v450_v3, %s3407_s18  ;;  %v448_v11 = vpack.c.bf16 %v437_v9, %v436_v8  ;;  %v433_v12 = vld [vmem:[%s3541_s29 + $0x28] sm:$0xff]  ;;  %426 = vst [vmem:[#allocation2 + $0xe0] sm:$0xff] %v450_v3  ;;  %v449_v14 = vpack.c.bf16 %v439_v6, %v438_v5  ;;  %vm368_vm4 = vcmask 7168   ;;  %vm3643_vm5 = vmor %vm386_vm3, %vm385_vm2  ;;  %vm501_vm6 = vcmask 1043456   ;;  %s311_s13 = sld [smem:[#allocation4]] }
  0x2f   : > { %v318_v13 = vld [vmem:[%s3541_s29 + $0x30] sm:$0xff]  ;;  %v319_v15 = vld [vmem:[%s3541_s29 + $0x38] sm:$0xff]  ;;  %427 = vst [vmem:[#allocation2 + $0xf0] sm:$0xff] %v451_v7  ;;  %v446_v17 = vpack.c.bf16 %v433_v12, %v432_v10  ;;  %v312_v19 = vld [vmem:[%s3541_s29] sm:$0xff]  ;;  %3303 = vset.pattern.permute.xlu2 %v3408_v48  ;;  %vm502_vm7 = vcmask 1039364   ;;  %vm484_vm8 = vcmask 1039360  }
  0x30   : > { %v314_v16 = vld [vmem:[%s3541_s29 + $0x10] sm:$0xff]  ;;  %352 = vrot.lane.b32.xlu2 %v448_v11, %s3407_s18  ;;  %v315_v18 = vld [vmem:[%s3541_s29 + $0x18] sm:$0xff]  ;;  %v313_v20 = vld [vmem:[%s3541_s29 + $0x8] sm:$0xff]  ;;  %424 = vst [vmem:[#allocation2 + $0xc0] sm:$0xff] %v448_v11  ;;  %v331_v21 = vpack.c.bf16 %v319_v15, %v318_v13  ;;  %vm1085_vm10 = vcmask 523264   ;;  %s4254_s21 = scalar_lea.vmem [#allocation8], %s2566_s19 }
  0x31   : > { %425 = vst [vmem:[#allocation2 + $0xd0] sm:$0xff] %v449_v14  ;;  %v328_v22 = vpack.c.bf16 %v313_v20, %v312_v19  ;;  %v329_v23 = vpack.c.bf16 %v315_v18, %v314_v16  ;;  %v2612_v24 = vld [vmem:[%s3541_s29 + $0xe0] sm:$0xff]  ;;  %v2613_v25 = vld [vmem:[%s3541_s29 + $0xe8] sm:$0xff]  ;;  %v2582_v27 = vld [vmem:[%s3541_s29 + $0xf0] sm:$0xff]  ;;  %s3249_s19 = sshll.u32 %s3470_s3, 8  ;;  %s2482_s3 = sshll.u32 %s4254_s21, 4  ;;  %s2483_s3 = int_to_ptr.vmem [resolvable:$true] %s2482_s3 }
  0x32   : > { %422 = vst [vmem:[#allocation2 + $0xa0] sm:$0xff] %v446_v17  ;;  %v647_v26 = vpack.c.bf16 %v2613_v25, %v2612_v24  ;;  %v2583_v28 = vld [vmem:[%s3541_s29 + $0xf8] sm:$0xff]  ;;  %v2576_v30 = vld [vmem:[%s3541_s29 + $0xc0] sm:$0xff]  ;;  %v2577_v31 = vld [vmem:[%s3541_s29 + $0xc8] sm:$0xff]  ;;  %s2469_s14 = scalar_lea.sflag [#allocation7], %s3535_s17  ;;  %s3356_s27 = scalar_lea.hbm %s4402_s6, 512 }
  0x33   : > { %423 = vst [vmem:[#allocation2 + $0xb0] sm:$0xff] %v331_v21  ;;  %v536_v29 = vpack.c.bf16 %v2583_v28, %v2582_v27  ;;  %v533_v32 = vpack.c.bf16 %v2577_v31, %v2576_v30  ;;  %v2610_v33 = vld [vmem:[%s3541_s29 + $0xd0] sm:$0xff]  ;;  %v2611_v34 = vld [vmem:[%s3541_s29 + $0xd8] sm:$0xff]  ;;  %v2604_v39 = vld [vmem:[%s3541_s29 + $0xa0] sm:$0xff] }
  0x34   : > { %420 = vst [vmem:[#allocation2 + $0x80] sm:$0xff] %v328_v22  ;;  %v646_v35 = vpack.c.bf16 %v2611_v34, %v2610_v33  ;;  %v2606_v36 = vld [vmem:[%s3541_s29 + $0xb0] sm:$0xff]  ;;  %v2607_v37 = vld [vmem:[%s3541_s29 + $0xb8] sm:$0xff]  ;;  %v2605_v40 = vld [vmem:[%s3541_s29 + $0xa8] sm:$0xff] }
  0x35   : > { %421 = vst [vmem:[#allocation2 + $0x90] sm:$0xff] %v329_v23  ;;  %v644_v38 = vpack.c.bf16 %v2607_v37, %v2606_v36  ;;  %v643_v41 = vpack.c.bf16 %v2605_v40, %v2604_v39  ;;  %v2600_v42 = vld [vmem:[%s3541_s29 + $0x80] sm:$0xff]  ;;  %v2601_v43 = vld [vmem:[%s3541_s29 + $0x88] sm:$0xff]  ;;  %v2570_v45 = vld [vmem:[%s3541_s29 + $0x90] sm:$0xff] }
  0x36   : > { %474 = vrot.lane.b32.xlu1 %v451_v7, %s3406_s9  ;;  %358 = vrot.lane.b32.xlu0 %v451_v7, %s3407_s18  ;;  %623 = vst [vmem:[#allocation2 + $0xe8] sm:$0xff] %v647_v26  ;;  %v641_v44 = vpack.c.bf16 %v2601_v43, %v2600_v42  ;;  %v2571_v46 = vld [vmem:[%s3541_s29 + $0x98] sm:$0xff]  ;;  %v2762_v49 = vld [vmem:[#allocation2 + $0xe0] sm:$0xf]  ;;  %v3174_v50 = vld [vmem:[#allocation2 + $0xec] sm:$0xf0] }
  0x37   : > { %624 = vst [vmem:[#allocation2 + $0xf8] sm:$0xff] %v536_v29  ;;  %v530_v47 = vpack.c.bf16 %v2571_v46, %v2570_v45  ;;  %v3172_v51 = vld [vmem:[#allocation2 + $0xe4] sm:$0xf]  ;;  %v2763_v52 = vor.u32 %v3174_v50, %v2762_v49  ;;  %v2764_v53 = vld [vmem:[#allocation2 + $0xf0] sm:$0xf0]  ;;  %vm3656_vm9 = vmor %vm502_vm7, %vm501_vm6 }
  0x38   : > { %354 = vrot.lane.b32.xlu2 %v449_v14, %s3407_s18  ;;  %621 = vst [vmem:[#allocation2 + $0xc8] sm:$0xff] %v533_v32  ;;  %v2767_v54 = vor.u32 %v3172_v51, %v2764_v53  ;;  %v2746_v55 = vld [vmem:[#allocation2 + $0xc0] sm:$0xf]  ;;  %v3170_v56 = vld [vmem:[#allocation2 + $0xcc] sm:$0xf0] }
  0x39   : > { %622 = vst [vmem:[#allocation2 + $0xd8] sm:$0xff] %v646_v35  ;;  %1098 = vmatpush.bf16.msra.mxu0 %v2763_v52  ;;  %v3168_v57 = vld [vmem:[#allocation2 + $0xc4] sm:$0xf]  ;;  %v2747_v58 = vor.u32 %v3170_v56, %v2746_v55  ;;  %v2748_v59 = vld [vmem:[#allocation2 + $0xd0] sm:$0xf0] }
  0x3a   : > { %620 = vst [vmem:[#allocation2 + $0xb8] sm:$0xff] %v644_v38  ;;  %1156 = vmatpush.bf16.msra.mxu2 %v2767_v54  ;;  %v2751_v61 = vor.u32 %v3168_v57, %v2748_v59  ;;  %v2730_v63 = vld [vmem:[#allocation2 + $0xa0] sm:$0xf]  ;;  %v3166_v0 = vld [vmem:[#allocation2 + $0xac] sm:$0xf0] }
  0x3b   : > { %619 = vst [vmem:[#allocation2 + $0xa8] sm:$0xff] %v643_v41  ;;  %v3164_v1 = vld [vmem:[#allocation2 + $0xa4] sm:$0xf]  ;;  %v2731_v4 = vor.u32 %v3166_v0, %v2730_v63  ;;  %v2732_v5 = vld [vmem:[#allocation2 + $0xb0] sm:$0xf0] }
  0x3c   : > { %617 = vst [vmem:[#allocation2 + $0x88] sm:$0xff] %v641_v44  ;;  %v2735_v6 = vor.u32 %v3164_v1, %v2732_v5  ;;  %v2714_v7 = vld [vmem:[#allocation2 + $0x80] sm:$0xf]  ;;  %v3162_v8 = vld [vmem:[#allocation2 + $0x8c] sm:$0xf0] }
  0x3d   : > { %618 = vst [vmem:[#allocation2 + $0x98] sm:$0xff] %v530_v47  ;;  %1099 = vmatpush.bf16.msra.mxu0 %v2747_v58  ;;  %v3160_v9 = vld [vmem:[#allocation2 + $0x84] sm:$0xf]  ;;  %v2715_v10 = vor.u32 %v3162_v8, %v2714_v7 }
  0x3e   : > { %470 = vrot.lane.b32.xlu1 %v449_v14, %s3406_s9  ;;  %468 = vrot.lane.b32.xlu0 %v448_v11, %s3406_s9  ;;  %278 = vst.msk [vmem:[#allocation2] sm:$0xf] %vm277_vm0, %v3408_v48  ;;  %v2716_v11 = vld [vmem:[#allocation2 + $0x90] sm:$0xf0] }
  0x3f   : > { %279 = vst.msk [vmem:[#allocation2 + $0x10] sm:$0xf] %vm277_vm0, %v3408_v48  ;;  %1157 = vmatpush.bf16.msra.mxu2 %v2751_v61  ;;  %v2719_v13 = vor.u32 %v3160_v9, %v2716_v11 }
  0x40   : > { %348 = vrot.lane.b32.xlu2 %v446_v17, %s3407_s18  ;;  %280 = vst.msk [vmem:[#allocation2 + $0x20] sm:$0xf] %vm277_vm0, %v3408_v48 }
  0x41   : > { %281 = vst.msk [vmem:[#allocation2 + $0x30] sm:$0xf] %vm277_vm0, %v3408_v48  ;;  %1100 = vmatpush.bf16.msra.mxu0 %v2731_v4  ;;  %v768_v4 = vld [vmem:[%s4398_s2 + $0x38] sm:$0xff] }
  0x42   : > { %283 = vst.msk [vmem:[#allocation2 + $0x50] sm:$0xf] %vm277_vm0, %v3408_v48 }
  0x43   : > { %284 = vst.msk [vmem:[#allocation2 + $0x60] sm:$0xf] %vm277_vm0, %v3408_v48  ;;  %1158 = vmatpush.bf16.msra.mxu2 %v2735_v6 }
  0x44   : > { %285 = vst.msk [vmem:[#allocation2 + $0x70] sm:$0xf] %vm277_vm0, %v3408_v48 }
  0x45   : > { %295 = vst.msk [vmem:[#allocation2 + $0x8] sm:$0xf] %vm277_vm0, %v3408_v48  ;;  %1101 = vmatpush.bf16.msra.mxu0 %v2715_v10 }
  0x46   : > { %464 = vrot.lane.b32.xlu1 %v446_v17, %s3406_s9  ;;  %350 = vrot.lane.b32.xlu0 %v331_v21, %s3407_s18  ;;  %296 = vst.msk [vmem:[#allocation2 + $0x18] sm:$0xf] %vm277_vm0, %v3408_v48 }
  0x47   : > { %297 = vst.msk [vmem:[#allocation2 + $0x28] sm:$0xf] %vm277_vm0, %v3408_v48  ;;  %1159 = vmatpush.bf16.msra.mxu2 %v2719_v13 }
  0x48   : > { %466 = vrot.lane.b32.xlu2 %v331_v21, %s3406_s9  ;;  %298 = vst.msk [vmem:[#allocation2 + $0x38] sm:$0xf] %vm277_vm0, %v3408_v48 }
  0x49   : > { %299 = vst.msk [vmem:[#allocation2 + $0x48] sm:$0xf] %vm277_vm0, %v3408_v48 }
  0x4a   : > { %300 = vst.msk [vmem:[#allocation2 + $0x58] sm:$0xf] %vm277_vm0, %v3408_v48 }
  0x4b   : > { %301 = vst.msk [vmem:[#allocation2 + $0x68] sm:$0xf] %vm277_vm0, %v3408_v48 }
  0x4c   : > { %302 = vst.msk [vmem:[#allocation2 + $0x78] sm:$0xf] %vm277_vm0, %v3408_v48 }
  0x4d   : > { %293 = vst.msk [vmem:[#allocation2 + $0x164] sm:$0xf] %vm286_vm1, %v3408_v48 }
  0x4e   : > { %346 = vrot.lane.b32.xlu1 %v329_v23, %s3407_s18  ;;  %344 = vrot.lane.b32.xlu0 %v328_v22, %s3407_s18  ;;  %287 = vst.msk [vmem:[#allocation2 + $0x104] sm:$0xf] %vm286_vm1, %v3408_v48 }
  0x4f   : > { %288 = vst.msk [vmem:[#allocation2 + $0x114] sm:$0xf] %vm286_vm1, %v3408_v48 }
  0x50   : > { %460 = vrot.lane.b32.xlu2 %v328_v22, %s3406_s9  ;;  %289 = vst.msk [vmem:[#allocation2 + $0x124] sm:$0xf] %vm286_vm1, %v3408_v48 }
  0x51   : > { %290 = vst.msk [vmem:[#allocation2 + $0x134] sm:$0xf] %vm286_vm1, %v3408_v48 }
  0x52   : > { %291 = vst.msk [vmem:[#allocation2 + $0x144] sm:$0xf] %vm286_vm1, %v3408_v48 }
  0x53   : > { %292 = vst.msk [vmem:[#allocation2 + $0x154] sm:$0xf] %vm286_vm1, %v3408_v48 }
  0x54   : > { %294 = vst.msk [vmem:[#allocation2 + $0x174] sm:$0xf] %vm286_vm1, %v3408_v48 }
  0x55   : > { %303 = vst.msk [vmem:[#allocation2 + $0x10c] sm:$0xf] %vm286_vm1, %v3408_v48 }
  0x56   : > { %462 = vrot.lane.b32.xlu0 %v329_v23, %s3406_s9  ;;  %669 = vrot.lane.b32.xlu1 %v647_v26, %s3406_s9  ;;  %304 = vst.msk [vmem:[#allocation2 + $0x11c] sm:$0xf] %vm286_vm1, %v3408_v48 }
  0x57   : > { %305 = vst.msk [vmem:[#allocation2 + $0x12c] sm:$0xf] %vm286_vm1, %v3408_v48 }
  0x58   : > { %671 = vrot.lane.b32.xlu2 %v536_v29, %s3406_s9  ;;  %306 = vst.msk [vmem:[#allocation2 + $0x13c] sm:$0xf] %vm286_vm1, %v3408_v48 }
  0x59   : > { %307 = vst.msk [vmem:[#allocation2 + $0x14c] sm:$0xf] %vm286_vm1, %v3408_v48 }
  0x5a   : > { %308 = vst.msk [vmem:[#allocation2 + $0x15c] sm:$0xf] %vm286_vm1, %v3408_v48 }
  0x5b   : > { %309 = vst.msk [vmem:[#allocation2 + $0x16c] sm:$0xf] %vm286_vm1, %v3408_v48 }
  0x5c   : > { %310 = vst.msk [vmem:[#allocation2 + $0x17c] sm:$0xf] %vm286_vm1, %v3408_v48 }
  0x5e   : > { %559 = vrot.lane.b32.xlu1 %v536_v29, %s3407_s18  ;;  %557 = vrot.lane.b32.xlu0 %v647_v26, %s3407_s18 }
  0x60   : > { %665 = vrot.lane.b32.xlu2 %v533_v32, %s3406_s9 }
  0x66   : > { %553 = vrot.lane.b32.xlu1 %v533_v32, %s3407_s18  ;;  %667 = vrot.lane.b32.xlu0 %v646_v35, %s3406_s9 }
  0x68   : > { %555 = vrot.lane.b32.xlu2 %v646_v35, %s3407_s18 }
  0x6e   : > { %663 = vrot.lane.b32.xlu1 %v644_v38, %s3406_s9  ;;  %661 = vrot.lane.b32.xlu0 %v643_v41, %s3406_s9 }
  0x70   : > { %549 = vrot.lane.b32.xlu2 %v643_v41, %s3407_s18 }
  0x76   : > { %657 = vrot.lane.b32.xlu1 %v641_v44, %s3406_s9  ;;  %551 = vrot.lane.b32.xlu0 %v644_v38, %s3407_s18 }
  0x78   : > { %659 = vrot.lane.b32.xlu2 %v530_v47, %s3406_s9 }
  0x7e   : > { %547 = vrot.lane.b32.xlu1 %v530_v47, %s3407_s18  ;;  %545 = vrot.lane.b32.xlu0 %v641_v44, %s3407_s18 }
  0x86   : > { %806 = vperm.xlu0 %3304, %v768_v4  }
  0x8a   : > { %v353_v60 = vpop.permute.xlu2 %352 }
  0x8b   : > { %v364_v62 = vrot.slane %v353_v60, 4 }
  0x8d   : > { %v373_v3 = vsel %vm368_vm4, %v364_v62, %v353_v60  ;;  %v765_v60 = vld [vmem:[%s4398_s2 + $0x20] sm:$0xff] }
  0x8e   : > { %392 = vst.msk [vmem:[#allocation2 + $0x40] sm:$0xff] %vm3643_vm5, %v373_v3  ;;  %791 = vperm.xlu1 %3305, %v765_v60   ;;  %v3169_v60 = vld [vmem:[#allocation2 + $0xcc] sm:$0xf] }
  0x92   : > { %v355_v12 = vpop.permute.xlu2 %354 }
  0x93   : > { %v365_v14 = vrot.slane %v355_v12, 4 }
  0x95   : > { %v374_v15 = vsel %vm368_vm4, %v365_v14, %v355_v12  ;;  %v2682_v56 = vld [vmem:[#allocation2 + $0x40] sm:$0xf]  ;;  %v3152_v57 = vld [vmem:[#allocation2 + $0x44] sm:$0xf] }
  0x96   : > { %393 = vst.msk [vmem:[#allocation2 + $0x50] sm:$0xff] %vm3643_vm5, %v374_v15 }
  0x9a   : > { %v349_v16 = vpop.permute.xlu2 %348 }
  0x9b   : > { %v362_v17 = vrot.slane %v349_v16, 4 }
  0x9d   : > { %v371_v18 = vsel %vm368_vm4, %v362_v17, %v349_v16  ;;  %v3154_v58 = vld [vmem:[#allocation2 + $0x4c] sm:$0xf0]  ;;  %v2684_v59 = vld [vmem:[#allocation2 + $0x50] sm:$0xf0] }
  0x9e   : > { %390 = vst.msk [vmem:[#allocation2 + $0x20] sm:$0xff] %vm3643_vm5, %v371_v18  ;;  %v2683_v1 = vor.u32 %v3154_v58, %v2682_v56  ;;  %v2687_v3 = vor.u32 %v3152_v57, %v2684_v59  ;;  %v763_v16 = vld [vmem:[%s4398_s2 + $0x10] sm:$0xff] }
  0x9f   : > { %781 = vperm.xlu1 %3305, %v763_v16  }
  0xa0   : > { %v473_v19 = vpop.permute.xlu1 %472  ;;  %v357_v20 = vpop.permute.xlu0 %356 }
  0xa1   : > { %v482_v22 = vrot.slane %v473_v19, 4  ;;  %v366_v23 = vrot.slane %v357_v20, 4 }
  0xa2   : > { %v467_v24 = vpop.permute.xlu2 %466 }
  0xa3   : > { %v491_v25 = vsel %vm484_vm8, %v473_v19, %v482_v22  ;;  %v375_v26 = vsel %vm368_vm4, %v366_v23, %v357_v20  ;;  %v479_v27 = vrot.slane %v467_v24, 4 }
  0xa4   : > { %510 = vst.msk [vmem:[#allocation2 + $0x160] sm:$0xff] %vm3656_vm9, %v491_v25 }
  0xa5   : > { %394 = vst.msk [vmem:[#allocation2 + $0x60] sm:$0xff] %vm3643_vm5, %v375_v26  ;;  %v488_v28 = vsel %vm484_vm8, %v467_v24, %v479_v27  ;;  %v2666_v24 = vld [vmem:[#allocation2 + $0x20] sm:$0xf]  ;;  %v3148_v25 = vld [vmem:[#allocation2 + $0x24] sm:$0xf] }
  0xa6   : > { %507 = vst.msk [vmem:[#allocation2 + $0x130] sm:$0xff] %vm3656_vm9, %v488_v28  ;;  %v761_v26 = vld [vmem:[%s4398_s2] sm:$0xff] }
  0xa7   : > { %771 = vperm.xlu0 %3304, %v761_v26  }
  0xa8   : > { %v475_v29 = vpop.permute.xlu1 %474  ;;  %v359_v30 = vpop.permute.xlu0 %358 }
  0xa9   : > { %v483_v31 = vrot.slane %v475_v29, 4  ;;  %v367_v32 = vrot.slane %v359_v30, 4 }
  0xaa   : > { %v461_v33 = vpop.permute.xlu2 %460 }
  0xab   : > { %v492_v34 = vsel %vm484_vm8, %v475_v29, %v483_v31  ;;  %v376_v35 = vsel %vm368_vm4, %v367_v32, %v359_v30  ;;  %v476_v36 = vrot.slane %v461_v33, 4  ;;  %v2826_v43 = vld [vmem:[#allocation2 + $0x160] sm:$0xf]  ;;  %v3188_v44 = vld [vmem:[#allocation2 + $0x164] sm:$0xf] }
  0xac   : > { %511 = vst.msk [vmem:[#allocation2 + $0x170] sm:$0xff] %vm3656_vm9, %v492_v34  ;;  %v2698_v42 = vld [vmem:[#allocation2 + $0x60] sm:$0xf]  ;;  %v3156_v48 = vld [vmem:[#allocation2 + $0x64] sm:$0xf] }
  0xad   : > { %395 = vst.msk [vmem:[#allocation2 + $0x70] sm:$0xff] %vm3643_vm5, %v376_v35  ;;  %v485_v37 = vsel %vm484_vm8, %v461_v33, %v476_v36  ;;  %v3182_v22 = vld [vmem:[#allocation2 + $0x12c] sm:$0xf0]  ;;  %v2796_v23 = vld [vmem:[#allocation2 + $0x130] sm:$0xf0] }
  0xae   : > { %504 = vst.msk [vmem:[#allocation2 + $0x100] sm:$0xff] %vm3656_vm9, %v485_v37 }
  0xb0   : > { %v471_v38 = vpop.permute.xlu1 %470  ;;  %v469_v39 = vpop.permute.xlu0 %468 }
  0xb1   : > { %v481_v40 = vrot.slane %v471_v38, 4  ;;  %v480_v41 = vrot.slane %v469_v39, 4 }
  0xb2   : > { %v672_v5 = vpop.permute.xlu2 %671 }
  0xb3   : > { %v490_v45 = vsel %vm484_vm8, %v471_v38, %v481_v40  ;;  %v489_v46 = vsel %vm484_vm8, %v469_v39, %v480_v41  ;;  %v3190_v47 = vld [vmem:[#allocation2 + $0x16c] sm:$0xf0]  ;;  %v2828_v49 = vld [vmem:[#allocation2 + $0x170] sm:$0xf0]  ;;  %v680_v6 = vrot.slane %v672_v5, 4  ;;  %v762_v40 = vld [vmem:[%s4398_s2 + $0x8] sm:$0xff] }
  0xb4   : > { %509 = vst.msk [vmem:[#allocation2 + $0x150] sm:$0xff] %vm3656_vm9, %v490_v45  ;;  %v3158_v50 = vld [vmem:[#allocation2 + $0x6c] sm:$0xf0]  ;;  %v2827_v51 = vor.u32 %v3190_v47, %v2826_v43  ;;  %v2700_v52 = vld [vmem:[#allocation2 + $0x70] sm:$0xf0]  ;;  %v2831_v53 = vor.u32 %v3188_v44, %v2828_v49  ;;  %776 = vperm.xlu1 %3305, %v762_v40  }
  0xb5   : > { %508 = vst.msk [vmem:[#allocation2 + $0x140] sm:$0xff] %vm3656_vm9, %v489_v46  ;;  %v2699_v54 = vor.u32 %v3158_v50, %v2698_v42  ;;  %v2703_v55 = vor.u32 %v3156_v48, %v2700_v52  ;;  %v688_v13 = vsel %vm484_vm8, %v672_v5, %v680_v6  ;;  %v3173_v45 = vld [vmem:[#allocation2 + $0xec] sm:$0xf]  ;;  %v2772_v46 = vld [vmem:[#allocation2 + $0xf8] sm:$0xf0] }
  0xb6   : > { %1131 = vmatpush.bf16.msra.mxu1 %v2827_v51  ;;  %1189 = vmatpush.bf16.msra.mxu3 %v2831_v53  ;;  %704 = vst.msk [vmem:[#allocation2 + $0x178] sm:$0xff] %vm3656_vm9, %v688_v13  ;;  %v2618_v47 = vld [vmem:[%s4397_s1] sm:$0xf]  ;;  %v3137_v48 = vld [vmem:[%s4397_s1 + $0x4] sm:$0xf0]  ;;  %v2775_v57 = vor.u32 %v3173_v45, %v2772_v46 }
  0xb7   : > { %1102 = vmatpush.bf16.msra.mxu0 %v2699_v54  ;;  %1160 = vmatpush.bf16.msra.mxu2 %v2703_v55  ;;  %v2770_v5 = vld [vmem:[#allocation2 + $0xe8] sm:$0xf]  ;;  %v3175_v6 = vld [vmem:[#allocation2 + $0xf4] sm:$0xf0]  ;;  %v2740_v13 = vld [vmem:[#allocation2 + $0xb8] sm:$0xf0] }
  0xb8   : > { %v465_v61 = vpop.permute.xlu1 %464  ;;  %v351_v62 = vpop.permute.xlu0 %350  ;;  %v2738_v40 = vld [vmem:[#allocation2 + $0xa8] sm:$0xf]  ;;  %v2626_v45 = vld [vmem:[%s4397_s1 + $0x10] sm:$0xf]  ;;  %v3139_v46 = vld [vmem:[%s4397_s1 + $0x14] sm:$0xf0] }
  0xb9   : > { %v478_v63 = vrot.slane %v465_v61, 4  ;;  %v363_v0 = vrot.slane %v351_v62, 4 }
  0xba   : > { %v666_v27 = vpop.permute.xlu2 %665 }
  0xbb   : > { %v487_v7 = vsel %vm484_vm8, %v465_v61, %v478_v63  ;;  %v372_v8 = vsel %vm368_vm4, %v363_v0, %v351_v62  ;;  %1103 = vmatpush.bf16.msra.mxu0 %v2683_v1  ;;  %1161 = vmatpush.bf16.msra.mxu2 %v2687_v3  ;;  %v3186_v9 = vld [vmem:[#allocation2 + $0x14c] sm:$0xf0]  ;;  %v2812_v10 = vld [vmem:[#allocation2 + $0x150] sm:$0xf0]  ;;  %v677_v32 = vrot.slane %v666_v27, 4  ;;  %v3730_v63 = vor.u32 %v3137_v48, %v2618_v47 }
  0xbc   : > { %506 = vst.msk [vmem:[#allocation2 + $0x120] sm:$0xff] %vm3656_vm9, %v487_v7  ;;  %v2810_v11 = vld [vmem:[#allocation2 + $0x140] sm:$0xf]  ;;  %v3184_v12 = vld [vmem:[#allocation2 + $0x144] sm:$0xf]  ;;  %v767_v47 = vld [vmem:[%s4398_s2 + $0x30] sm:$0xff] }
  0xbd   : > { %391 = vst.msk [vmem:[#allocation2 + $0x30] sm:$0xff] %vm3643_vm5, %v372_v8  ;;  %v2811_v14 = vor.u32 %v3186_v9, %v2810_v11  ;;  %v2815_v15 = vor.u32 %v3184_v12, %v2812_v10  ;;  %v685_v39 = vsel %vm484_vm8, %v666_v27, %v677_v32  ;;  %v2756_v61 = vld [vmem:[#allocation2 + $0xd8] sm:$0xf0]  ;;  %v3136_v0 = vld [vmem:[%s4397_s1 + $0x4] sm:$0xf]  ;;  %801 = vperm.xlu2 %3303, %v767_v47  }
  0xbe   : > { %701 = vst.msk [vmem:[#allocation2 + $0x148] sm:$0xff] %vm3656_vm9, %v685_v39  ;;  %v2620_v1 = vld [vmem:[%s4397_s1 + $0x8] sm:$0xf0]  ;;  %v2759_v7 = vor.u32 %v3169_v60, %v2756_v61  ;;  %v2778_v8 = vld [vmem:[#allocation2 + $0x100] sm:$0xf] }
  0xbf   : > { %1132 = vmatpush.bf16.msra.mxu1 %v2811_v14  ;;  %1190 = vmatpush.bf16.msra.mxu3 %v2815_v15  ;;  %v3176_v9 = vld [vmem:[#allocation2 + $0x104] sm:$0xf]  ;;  %v3165_v12 = vld [vmem:[#allocation2 + $0xac] sm:$0xf]  ;;  %v2754_v14 = vld [vmem:[#allocation2 + $0xc8] sm:$0xf] }
  0xc0   : > { %v347_v17 = vpop.permute.xlu1 %346  ;;  %v345_v18 = vpop.permute.xlu0 %344  ;;  %v3191_v15 = vld [vmem:[#allocation2 + $0x174] sm:$0xf0]  ;;  %v2836_v16 = vld [vmem:[#allocation2 + $0x178] sm:$0xf0]  ;;  %v3138_v61 = vld [vmem:[%s4397_s1 + $0x14] sm:$0xf] }
  0xc1   : > { %v361_v19 = vrot.slane %v347_v17, 4  ;;  %v360_v20 = vrot.slane %v345_v18, 4 }
  0xc2   : > { %v556_v49 = vpop.permute.xlu2 %555 }
  0xc3   : > { %v370_v28 = vsel %vm368_vm4, %v361_v19, %v347_v17  ;;  %v369_v29 = vsel %vm368_vm4, %v360_v20, %v345_v18  ;;  %v2794_v30 = vld [vmem:[#allocation2 + $0x120] sm:$0xf]  ;;  %v3180_v31 = vld [vmem:[#allocation2 + $0x124] sm:$0xf]  ;;  %v566_v54 = vrot.slane %v556_v49, 4 }
  0xc4   : > { %389 = vst.msk [vmem:[#allocation2 + $0x10] sm:$0xff] %vm3643_vm5, %v370_v28  ;;  %v3150_v33 = vld [vmem:[#allocation2 + $0x2c] sm:$0xf0]  ;;  %v2668_v34 = vld [vmem:[#allocation2 + $0x30] sm:$0xf0]  ;;  %v2795_v35 = vor.u32 %v3182_v22, %v2794_v30  ;;  %v2799_v36 = vor.u32 %v3180_v31, %v2796_v23  ;;  %v2771_v23 = vor.u32 %v3175_v6, %v2770_v5  ;;  %v2743_v28 = vor.u32 %v3165_v12, %v2740_v13 }
  0xc5   : > { %388 = vst.msk [vmem:[#allocation2] sm:$0xff] %vm3643_vm5, %v369_v29  ;;  %v2667_v37 = vor.u32 %v3150_v33, %v2666_v24  ;;  %v2671_v38 = vor.u32 %v3148_v25, %v2668_v34  ;;  %v574_v62 = vsel %vm368_vm4, %v566_v54, %v556_v49  ;;  %v3171_v24 = vld [vmem:[#allocation2 + $0xd4] sm:$0xf0]  ;;  %v3746_v31 = vor.u32 %v3136_v0, %v2620_v1  ;;  %v3161_v34 = vld [vmem:[#allocation2 + $0x8c] sm:$0xf] }
  0xc6   : > { %1133 = vmatpush.bf16.msra.mxu1 %v2795_v35  ;;  %1191 = vmatpush.bf16.msra.mxu3 %v2799_v36  ;;  %590 = vst.msk [vmem:[#allocation2 + $0x58] sm:$0xff] %vm3643_vm5, %v574_v62  ;;  %v2724_v35 = vld [vmem:[#allocation2 + $0x98] sm:$0xf0] }
  0xc7   : > { %1104 = vmatpush.bf16.msra.mxu0 %v2667_v37  ;;  %1162 = vmatpush.bf16.msra.mxu2 %v2671_v38  ;;  %v2755_v37 = vor.u32 %v3171_v24, %v2754_v14 }
  0xc8   : > { %v463_v41 = vpop.permute.xlu0 %462  ;;  %v670_v42 = vpop.permute.xlu1 %669 }
  0xc9   : > { %v477_v43 = vrot.slane %v463_v41, 4  ;;  %v679_v44 = vrot.slane %v670_v42, 4 }
  0xca   : > { %v550_v17 = vpop.permute.xlu2 %549 }
  0xcb   : > { %v486_v50 = vsel %vm484_vm8, %v463_v41, %v477_v43  ;;  %v3146_v51 = vld [vmem:[#allocation2 + $0xc] sm:$0xf0]  ;;  %v2652_v52 = vld [vmem:[#allocation2 + $0x10] sm:$0xf0]  ;;  %v687_v53 = vsel %vm484_vm8, %v670_v42, %v679_v44  ;;  %v563_v30 = vrot.slane %v550_v17, 4  ;;  %v2727_v42 = vor.u32 %v3161_v34, %v2724_v35 }
  0xcc   : > { %505 = vst.msk [vmem:[#allocation2 + $0x110] sm:$0xff] %vm3656_vm9, %v486_v50  ;;  %v2650_v55 = vld [vmem:[#allocation2] sm:$0xf]  ;;  %v3144_v56 = vld [vmem:[#allocation2 + $0x4] sm:$0xf] }
  0xcd   : > { %v2651_v58 = vor.u32 %v3146_v51, %v2650_v55  ;;  %v2655_v59 = vor.u32 %v3144_v56, %v2652_v52  ;;  %703 = vst.msk [vmem:[#allocation2 + $0x168] sm:$0xff] %vm3656_vm9, %v687_v53  ;;  %v571_v36 = vsel %vm368_vm4, %v563_v30, %v550_v17  ;;  %v3167_v41 = vld [vmem:[#allocation2 + $0xb4] sm:$0xf0]  ;;  %v2722_v52 = vld [vmem:[#allocation2 + $0x88] sm:$0xf] }
  0xce   : > { %587 = vst.msk [vmem:[#allocation2 + $0x28] sm:$0xff] %vm3643_vm5, %v571_v36  ;;  %v2739_v51 = vor.u32 %v3167_v41, %v2738_v40  ;;  %v3163_v55 = vld [vmem:[#allocation2 + $0x94] sm:$0xf0] }
  0xcf   : > { %1105 = vmatpush.bf16.msra.mxu0 %v2651_v58  ;;  %1163 = vmatpush.bf16.msra.mxu2 %v2655_v59  ;;  %v3773_v59 = vor.u32 %v3139_v46, %v2626_v45  ;;  %v2723_v60 = vor.u32 %v3163_v55, %v2722_v52  ;;  %v764_v30 = vld [vmem:[%s4398_s2 + $0x18] sm:$0xff] }
  0xd0   : > { %v560_v3 = vpop.permute.xlu1 %559  ;;  %v558_v4 = vpop.permute.xlu0 %557 }
  0xd1   : > { %v568_v10 = vrot.slane %v560_v3, 4  ;;  %v567_v11 = vrot.slane %v558_v4, 4 }
  0xd2   : > { %1106 = vmatmul.bf16.vlgmr.msra.gmra.mxu0 %v3730_v63  ;;  %1164 = vmatmul.bf16.vlgmr.msra.gmra.mxu2 %v3730_v63  ;;  %v660_v48 = vpop.permute.xlu2 %659 }
  0xd3   : > { %1272 = vmatpush.bf16.msrb.mxu0 %v2775_v57  ;;  %v3178_v18 = vld [vmem:[#allocation2 + $0x10c] sm:$0xf0]  ;;  %v2780_v19 = vld [vmem:[#allocation2 + $0x110] sm:$0xf0]  ;;  %v576_v20 = vsel %vm368_vm4, %v568_v10, %v560_v3  ;;  %v575_v22 = vsel %vm368_vm4, %v567_v11, %v558_v4  ;;  %v674_v54 = vrot.slane %v660_v48, 4  ;;  %v766_v10 = vld [vmem:[%s4398_s2 + $0x28] sm:$0xff] }
  0xd4   : > { %v2779_v25 = vor.u32 %v3178_v18, %v2778_v8  ;;  %v2783_v26 = vor.u32 %v3176_v9, %v2780_v19  ;;  %592 = vst.msk [vmem:[#allocation2 + $0x78] sm:$0xff] %vm3643_vm5, %v576_v20  ;;  %v2834_v27 = vld [vmem:[#allocation2 + $0x168] sm:$0xf]  ;;  %v3189_v29 = vld [vmem:[#allocation2 + $0x16c] sm:$0xf]  ;;  %796 = vperm.xlu2 %3303, %v766_v10  }
  0xd5   : > { %591 = vst.msk [vmem:[#allocation2 + $0x68] sm:$0xff] %vm3643_vm5, %v575_v22  ;;  %v2835_v32 = vor.u32 %v3191_v15, %v2834_v27  ;;  %v2839_v33 = vor.u32 %v3189_v29, %v2836_v16  ;;  %v682_v58 = vsel %vm484_vm8, %v660_v48, %v674_v54  ;;  %v2628_v4 = vld [vmem:[%s4397_s1 + $0x18] sm:$0xf0]  ;;  %v2818_v8 = vld [vmem:[#allocation2 + $0x148] sm:$0xf] }
  0xd6   : > { %1134 = vmatpush.bf16.msra.mxu1 %v2779_v25  ;;  %1192 = vmatpush.bf16.msra.mxu3 %v2783_v26  ;;  %698 = vst.msk [vmem:[#allocation2 + $0x118] sm:$0xff] %vm3656_vm9, %v682_v58  ;;  %v3185_v9 = vld [vmem:[#allocation2 + $0x14c] sm:$0xf]  ;;  %v3155_v15 = vld [vmem:[#allocation2 + $0x54] sm:$0xf0]  ;;  %v3792_v20 = vor.u32 %v3138_v61, %v2628_v4 }
  0xd7   : > { %1273 = vmatpush.bf16.msrb.mxu0 %v2759_v7  ;;  %1305 = vmatpush.bf16.msrb.mxu2 %v2839_v33  ;;  %v2692_v7 = vld [vmem:[#allocation2 + $0x58] sm:$0xf0]  ;;  %v2634_v29 = vld [vmem:[%s4397_s1 + $0x20] sm:$0xf] }
  0xd8   : > { %v554_v38 = vpop.permute.xlu1 %553  ;;  %v668_v39 = vpop.permute.xlu0 %667 }
  0xd9   : > { %2840 = vmatmul.msk.bf16.vlgmr.msra.gmra.mxu1 %vm1085_vm10, %v3746_v31  ;;  %2844 = vmatmul.msk.bf16.vlgmr.msra.gmra.mxu3 %vm1085_vm10, %v3746_v31  ;;  %v565_v43 = vrot.slane %v554_v38, 4  ;;  %v678_v44 = vrot.slane %v668_v39, 4 }
  0xda   : > { %1214 = vmatpush.bf16.msrb.mxu1 %v2771_v23  ;;  %1247 = vmatpush.bf16.msrb.mxu3 %v2835_v32  ;;  %v3141_v32 = vld [vmem:[%s4397_s1 + $0x24] sm:$0xf0] }
  0xdb   : > { %1274 = vmatpush.bf16.msrb.mxu0 %v2743_v28  ;;  %v573_v49 = vsel %vm368_vm4, %v565_v43, %v554_v38  ;;  %v686_v50 = vsel %vm484_vm8, %v668_v39, %v678_v44  ;;  %v2708_v53 = vld [vmem:[#allocation2 + $0x78] sm:$0xf0]  ;;  %v3159_v3 = vld [vmem:[#allocation2 + $0x74] sm:$0xf0]  ;;  %v2635_v41 = vor.u32 %v3141_v32, %v2634_v29 }
  0xdc   : > { %589 = vst.msk [vmem:[#allocation2 + $0x48] sm:$0xff] %vm3643_vm5, %v573_v49  ;;  %v3157_v56 = vld [vmem:[#allocation2 + $0x6c] sm:$0xf]  ;;  %v2706_v1 = vld [vmem:[#allocation2 + $0x68] sm:$0xf]  ;;  %786 = vperm.xlu2 %3303, %v764_v30  }
  0xdd   : > { %702 = vst.msk [vmem:[#allocation2 + $0x158] sm:$0xff] %vm3656_vm9, %v686_v50  ;;  %v2711_v57 = vor.u32 %v3157_v56, %v2708_v53  ;;  %v2707_v13 = vor.u32 %v3159_v3, %v2706_v1  ;;  %v2788_v47 = vld [vmem:[#allocation2 + $0x118] sm:$0xf0]  ;;  %v3179_v48 = vld [vmem:[#allocation2 + $0x114] sm:$0xf0] }
  0xde   : > { %1215 = vmatpush.bf16.msrb.mxu1 %v2755_v37  ;;  %v2636_v49 = vld [vmem:[%s4397_s1 + $0x28] sm:$0xf0]  ;;  %v2642_v1 = vld [vmem:[%s4397_s1 + $0x30] sm:$0xf]  ;;  %v3143_v3 = vld [vmem:[%s4397_s1 + $0x34] sm:$0xf0] }
  0xdf   : > { %1275 = vmatpush.bf16.msrb.mxu0 %v2727_v42  ;;  %v3140_v42 = vld [vmem:[%s4397_s1 + $0x24] sm:$0xf]  ;;  %v3149_v50 = vld [vmem:[#allocation2 + $0x2c] sm:$0xf]  ;;  %v2643_v10 = vor.u32 %v3143_v3, %v2642_v1 }
  0xe0   : > { %v664_v62 = vpop.permute.xlu1 %663  ;;  %v662_v0 = vpop.permute.xlu0 %661  ;;  %v2639_v61 = vor.u32 %v3140_v42, %v2636_v49 }
  0xe1   : > { %v676_v5 = vrot.slane %v664_v62, 4  ;;  %v675_v6 = vrot.slane %v662_v0, 4 }
  0xe2   : > { %1216 = vmatpush.bf16.msrb.mxu1 %v2739_v51  ;;  %1111 = vmatmul.bf16.gmra.mxu0 %v3773_v59  ;;  %v2674_v51 = vld [vmem:[#allocation2 + $0x28] sm:$0xf] }
  0xe3   : > { %1276 = vmatpush.bf16.msrb.mxu0 %v2711_v57  ;;  %1169 = vmatmul.bf16.gmra.mxu2 %v3773_v59  ;;  %v684_v11 = vsel %vm484_vm8, %v664_v62, %v676_v5  ;;  %v683_v12 = vsel %vm484_vm8, %v662_v0, %v675_v6  ;;  %v2690_v14 = vld [vmem:[#allocation2 + $0x48] sm:$0xf]  ;;  %v3153_v16 = vld [vmem:[#allocation2 + $0x4c] sm:$0xf] }
  0xe4   : > { %700 = vst.msk [vmem:[#allocation2 + $0x138] sm:$0xff] %vm3656_vm9, %v684_v11  ;;  %v3187_v17 = vld [vmem:[#allocation2 + $0x154] sm:$0xf0]  ;;  %v2820_v18 = vld [vmem:[#allocation2 + $0x158] sm:$0xf0]  ;;  %v2695_v19 = vor.u32 %v3153_v16, %v2692_v7  ;;  %v2691_v24 = vor.u32 %v3155_v15, %v2690_v14 }
  0xe5   : > { %699 = vst.msk [vmem:[#allocation2 + $0x128] sm:$0xff] %vm3656_vm9, %v683_v12  ;;  %v2819_v22 = vor.u32 %v3187_v17, %v2818_v8  ;;  %v2823_v23 = vor.u32 %v3185_v9, %v2820_v18  ;;  %v3142_v11 = vld [vmem:[%s4397_s1 + $0x34] sm:$0xf]  ;;  %v2644_v12 = vld [vmem:[%s4397_s1 + $0x38] sm:$0xf0] }
  0xe6   : > { %1217 = vmatpush.bf16.msrb.mxu1 %v2723_v60 }
  0xe7   : > { %1277 = vmatpush.bf16.msrb.mxu0 %v2695_v19  ;;  %1248 = vmatpush.bf16.msrb.mxu3 %v2819_v22 }
  0xe8   : > { %v658_v25 = vpop.permute.xlu1 %657  ;;  %v552_v26 = vpop.permute.xlu0 %551  ;;  %1306 = vmatpush.bf16.msrb.mxu2 %v2823_v23 }
  0xe9   : > { %2841 = vmatmul.msk.bf16.gmra.mxu1 %vm1085_vm10, %v3792_v20  ;;  %2845 = vmatmul.msk.bf16.gmra.mxu3 %vm1085_vm10, %v3792_v20  ;;  %v673_v27 = vrot.slane %v658_v25, 4  ;;  %v564_v28 = vrot.slane %v552_v26, 4 }
  0xea   : > { %1218 = vmatpush.bf16.msrb.mxu1 %v2707_v13  ;;  %v2647_v13 = vor.u32 %v3142_v11, %v2644_v12 }
  0xeb   : > { %v681_v33 = vsel %vm484_vm8, %v658_v25, %v673_v27  ;;  %v572_v34 = vsel %vm368_vm4, %v564_v28, %v552_v26  ;;  %v3183_v35 = vld [vmem:[#allocation2 + $0x134] sm:$0xf0]  ;;  %v2804_v36 = vld [vmem:[#allocation2 + $0x138] sm:$0xf0] }
  0xec   : > { %697 = vst.msk [vmem:[#allocation2 + $0x108] sm:$0xff] %vm3656_vm9, %v681_v33  ;;  %v2802_v37 = vld [vmem:[#allocation2 + $0x128] sm:$0xf]  ;;  %v3181_v38 = vld [vmem:[#allocation2 + $0x12c] sm:$0xf] }
  0xed   : > { %588 = vst.msk [vmem:[#allocation2 + $0x38] sm:$0xff] %vm3643_vm5, %v572_v34  ;;  %v2803_v39 = vor.u32 %v3183_v35, %v2802_v37  ;;  %v2807_v40 = vor.u32 %v3181_v38, %v2804_v36 }
  0xee   : > { %1219 = vmatpush.bf16.msrb.mxu1 %v2691_v24  ;;  %v3871_v24 = vstv %s311_s13  ;;  %s2481_s13 = scalar_lea.hbm %s4402_s6, %s3249_s19 }
  0xef   : > { %1249 = vmatpush.bf16.msrb.mxu3 %v2803_v39  ;;  %1307 = vmatpush.bf16.msrb.mxu2 %v2807_v40  ;;  %s2484_s8 = sshll.u32 %s2481_s13, 4  ;;  %s2485_s8 = int_to_ptr.hbm [resolvable:$true] %s2484_s8 }
  0xf0   : > { %v548_v43 = vpop.permute.xlu1 %547  ;;  %v546_v44 = vpop.permute.xlu0 %545  ;;  %s3350_s15 = sshra.s32 %s2485_s8, 4  ;;  %s3351_s15 = int_to_ptr.hbm [resolvable:$true] %s3350_s15 }
  0xf1   : > { %v562_v45 = vrot.slane %v548_v43, 4  ;;  %v561_v46 = vrot.slane %v546_v44, 4  ;;  %s3352_s12 = scalar_lea.hbm %s3351_s15, 256  ;;  %p3357_p0 = scmp.lt.s32.totalorder %s3351_s15, %s4402_s6 }
  0xf2   : > { %1116 = vmatmul.bf16.gmra.mxu0 %v2635_v41  ;;  %p3353_p6 = scmp.ne.s32.totalorder %s3351_s15, %s3352_s12  ;;  %p3358_p1 = scmp.lt.s32.totalorder %s3356_s27, %s3352_s12 }
  0xf3   : > { %1174 = vmatmul.bf16.gmra.mxu2 %v2635_v41  ;;  %v570_v52 = vsel %vm368_vm4, %v562_v45, %v548_v43  ;;  %v569_v53 = vsel %vm368_vm4, %v561_v46, %v546_v44  ;;  %v3177_v54 = vld [vmem:[#allocation2 + $0x10c] sm:$0xf]  ;;  %v2786_v55 = vld [vmem:[#allocation2 + $0x108] sm:$0xf] }
  0xf4   : > { %586 = vst.msk [vmem:[#allocation2 + $0x18] sm:$0xff] %vm3643_vm5, %v570_v52  ;;  %v2676_v56 = vld [vmem:[#allocation2 + $0x38] sm:$0xf0]  ;;  %v3151_v57 = vld [vmem:[#allocation2 + $0x34] sm:$0xf0]  ;;  %v2791_v58 = vor.u32 %v3177_v54, %v2788_v47  ;;  %v2787_v60 = vor.u32 %v3179_v48, %v2786_v55  ;;  %p3354_p9 = pnand %p3353_p6, %p3499_p11  ;;  %p3359_p3 = por %p3358_p1, %p3357_p0 }
  0xf5   : > { %585 = vst.msk [vmem:[#allocation2 + $0x8] sm:$0xff] %vm3643_vm5, %v569_v53  ;;  %v2679_v62 = vor.u32 %v3149_v50, %v2676_v56  ;;  %v2675_v0 = vor.u32 %v3151_v57, %v2674_v51 }
  0xf6   : > { %1308 = vmatpush.bf16.msrb.mxu2 %v2791_v58  ;;  %1250 = vmatpush.bf16.msrb.mxu3 %v2787_v60  ;;  %p3355_p13 = pneg %p3354_p9 }
  0xf7   : > { %1278 = vmatpush.bf16.msrb.mxu0 %v2679_v62  ;;  %1220 = vmatpush.bf16.msrb.mxu1 %v2675_v0 }
  0xf8   : > { %p3360_p4 = pnand %p3359_p3, %p3355_p13 }
  0xf9   : > { %2842 = vmatmul.msk.bf16.gmra.mxu1 %vm1085_vm10, %v2639_v61  ;;  %2846 = vmatmul.msk.bf16.gmra.mxu3 %vm1085_vm10, %v2639_v61 }
  0xfb   : > { %v2660_v4 = vld [vmem:[#allocation2 + $0x18] sm:$0xf0]  ;;  %v3147_v5 = vld [vmem:[#allocation2 + $0x14] sm:$0xf0] }
  0xfc   : > { %v3145_v6 = vld [vmem:[#allocation2 + $0xc] sm:$0xf]  ;;  %v2658_v7 = vld [vmem:[#allocation2 + $0x8] sm:$0xf] }
  0xfd   : > { %v2663_v8 = vor.u32 %v3145_v6, %v2660_v4  ;;  %v2659_v9 = vor.u32 %v3147_v5, %v2658_v7 }
  0xff   : > { %1279 = vmatpush.bf16.msrb.mxu0 %v2663_v8  ;;  %1221 = vmatpush.bf16.msrb.mxu1 %v2659_v9 }
 0x102   : > { %1121 = vmatmul.bf16.gmra.mxu0 %v2643_v10 }
 0x103   : > { %1179 = vmatmul.bf16.gmra.mxu2 %v2643_v10 }
 0x109   : > { %2843 = vmatmul.msk.bf16.gmra.mxu1 %vm1085_vm10, %v2647_v13  ;;  %2847 = vmatmul.msk.bf16.gmra.mxu3 %vm1085_vm10, %v2647_v13 }
 0x112   : > { %1280 = vmatmul.bf16.vlgmr.msrb.gmra.mxu0 %v3730_v63 }
 0x113   : > { %2852 = vmatmul.msk.bf16.vlgmr.msrb.gmra.mxu2 %vm1085_vm10, %v3746_v31 }
 0x119   : > { %1222 = vmatmul.bf16.vlgmr.msrb.gmra.mxu1 %v3730_v63  ;;  %2848 = vmatmul.msk.bf16.vlgmr.msrb.gmra.mxu3 %vm1085_vm10, %v3746_v31  ;;  %v3858_v63 = vpop.permute.xlu1 %791  ;;  %v3860_v31 = vpop.permute.xlu0 %806 }
 0x121   : > { %v3863_v14 = vpop.permute.xlu1 %781  ;;  %v3865_v15 = vpop.permute.xlu0 %771 }
 0x122   : > { %1285 = vmatmul.bf16.gmra.mxu0 %v3773_v59 }
 0x123   : > { %2853 = vmatmul.msk.bf16.gmra.mxu2 %vm1085_vm10, %v3792_v20 }
 0x129   : > { %1227 = vmatmul.bf16.gmra.mxu1 %v3773_v59  ;;  %2849 = vmatmul.msk.bf16.gmra.mxu3 %vm1085_vm10, %v3792_v20  ;;  %v3868_v20 = vpop.permute.xlu2 %801  ;;  %v3873_v25 = vpop.permute.xlu1 %776 }
 0x131   : > { %v3878_v38 = vpop.permute.xlu2 %796 }
 0x132   : > { %1290 = vmatmul.bf16.gmra.mxu0 %v2635_v41 }
 0x133   : > { %2854 = vmatmul.msk.bf16.gmra.mxu2 %vm1085_vm10, %v2639_v61 }
 0x139   : > { %1232 = vmatmul.bf16.gmra.mxu1 %v2635_v41  ;;  %2850 = vmatmul.msk.bf16.gmra.mxu3 %vm1085_vm10, %v2639_v61  ;;  %v3890_v54 = vpop.permute.xlu2 %786 }
 0x142   : > { %1295 = vmatmul.bf16.gmra.mxu0 %v2643_v10 }
 0x143   : > { %2855 = vmatmul.msk.bf16.gmra.mxu2 %vm1085_vm10, %v2647_v13 }
 0x149   : > { %1237 = vmatmul.bf16.gmra.mxu1 %v2643_v10  ;;  %2851 = vmatmul.msk.bf16.gmra.mxu3 %vm1085_vm10, %v2647_v13 }
 0x14f   : > { %v1107_v59 = vpop.f32.mrf.mxu0 }
 0x150   : > { %v1108_v17 = vadd.f32 %v1107_v59, %v3865_v15 }
 0x155   : > { %v1165_v16 = vpop.f32.mrf.mxu2 }
 0x156   : > { %v1136_v18 = vpop.f32.mrf.mxu1  ;;  %v1166_v23 = vadd.f32 %v1165_v16, %v3865_v15 }
 0x157   : > { %v1109_v19 = vpop.f32.mrf.mxu0  ;;  %v1137_v22 = vadd.f32 %v1136_v18, %v1108_v17 }
 0x158   : > { %v1110_v34 = vadd.f32 %v1109_v19, %v3873_v25 }
 0x159   : > { %v1363_v27 = vmul.f32 %v3871_v24, %v1137_v22  ;;  %vm1330_vm11 = vcmp.gt.f32.partialorder %v1137_v22, 0.0 }
 0x15b   : > { %v1395_v36 = vsel %vm1330_vm11, %v1137_v22, %v1363_v27 }
 0x15c   : > { %v1194_v26 = vpop.f32.mrf.mxu3 }
 0x15d   : > { %v1167_v28 = vpop.f32.mrf.mxu2  ;;  %v1195_v29 = vadd.f32 %v1194_v26, %v1166_v23 }
 0x15e   : > { %v1138_v30 = vpop.f32.mrf.mxu1  ;;  %v1168_v40 = vadd.f32 %v1167_v28, %v3873_v25 }
 0x15f   : > { %vm1331_vm12 = vcmp.gt.f32.partialorder %v1195_v29, 0.0  ;;  %v1364_v32 = vmul.f32 %v3871_v24, %v1195_v29  ;;  %v1112_v33 = vpop.f32.mrf.mxu0  ;;  %v1139_v35 = vadd.f32 %v1138_v30, %v1110_v34 }
 0x160   : > { %v1113_v42 = vadd.f32 %v1112_v33, %v3863_v14 }
 0x161   : > { %v1396_v37 = vsel %vm1331_vm12, %v1195_v29, %v1364_v32  ;;  %v1367_v43 = vmul.f32 %v3871_v24, %v1139_v35  ;;  %vm1334_vm13 = vcmp.gt.f32.partialorder %v1139_v35, 0.0 }
 0x162   : > { %v3880_v39 = vpack.c.bf16 %v1396_v37, %v1395_v36 }
 0x163   : > { %v1399_v51 = vsel %vm1334_vm13, %v1139_v35, %v1367_v43 }
 0x164   : > { %v1196_v41 = vpop.f32.mrf.mxu3  ;;  %1531 = vst [vmem:[#allocation2 + $0x80] sm:$0xff] %v3880_v39 }
 0x165   : > { %v1197_v45 = vadd.f32 %v1196_v41, %v1168_v40 }
 0x166   : > { %v1170_v44 = vpop.f32.mrf.mxu2  ;;  %v1141_v46 = vpop.f32.mrf.mxu1 }
 0x167   : > { %vm1335_vm14 = vcmp.gt.f32.partialorder %v1197_v45, 0.0  ;;  %v1368_v47 = vmul.f32 %v3871_v24, %v1197_v45  ;;  %v1114_v48 = vpop.f32.mrf.mxu0  ;;  %v1171_v49 = vadd.f32 %v1170_v44, %v3863_v14  ;;  %v1142_v50 = vadd.f32 %v1141_v46, %v1113_v42 }
 0x168   : > { %v1115_v0 = vadd.f32 %v1114_v48, %v3890_v54 }
 0x169   : > { %v1400_v52 = vsel %vm1335_vm14, %v1197_v45, %v1368_v47  ;;  %v1371_v56 = vmul.f32 %v3871_v24, %v1142_v50  ;;  %vm1338_vm15 = vcmp.gt.f32.partialorder %v1142_v50, 0.0 }
 0x16a   : > { %v3888_v53 = vpack.c.bf16 %v1400_v52, %v1399_v51 }
 0x16b   : > { %v1403_v3 = vsel %vm1338_vm15, %v1142_v50, %v1371_v56 }
 0x16c   : > { %v1199_v55 = vpop.f32.mrf.mxu3  ;;  %1532 = vst [vmem:[#allocation2 + $0x90] sm:$0xff] %v3888_v53 }
 0x16d   : > { %v1200_v58 = vadd.f32 %v1199_v55, %v1171_v49 }
 0x16e   : > { %v1172_v57 = vpop.f32.mrf.mxu2  ;;  %v1143_v60 = vpop.f32.mrf.mxu1 }
 0x16f   : > { %vm1339_vm0 = vcmp.gt.f32.partialorder %v1200_v58, 0.0  ;;  %v1372_v61 = vmul.f32 %v3871_v24, %v1200_v58  ;;  %v1117_v62 = vpop.f32.mrf.mxu0  ;;  %v1144_v1 = vadd.f32 %v1143_v60, %v1115_v0  ;;  %v1173_v6 = vadd.f32 %v1172_v57, %v3890_v54 }
 0x170   : > { %v1118_v8 = vadd.f32 %v1117_v62, %v3858_v63 }
 0x171   : > { %v1404_v4 = vsel %vm1339_vm0, %v1200_v58, %v1372_v61  ;;  %v1375_v9 = vmul.f32 %v3871_v24, %v1144_v1  ;;  %vm1342_vm1 = vcmp.gt.f32.partialorder %v1144_v1, 0.0 }
 0x172   : > { %v3896_v5 = vpack.c.bf16 %v1404_v4, %v1403_v3 }
 0x173   : > { %v1407_v18 = vsel %vm1342_vm1, %v1144_v1, %v1375_v9 }
 0x174   : > { %v1201_v7 = vpop.f32.mrf.mxu3  ;;  %1559 = vrot.lane.b32.xlu1 %v3896_v5, %s3406_s9  ;;  %1533 = vst [vmem:[#allocation2 + $0xa0] sm:$0xff] %v3896_v5 }
 0x175   : > { %v1202_v11 = vadd.f32 %v1201_v7, %v1173_v6 }
 0x176   : > { %v1175_v10 = vpop.f32.mrf.mxu2  ;;  %v1146_v12 = vpop.f32.mrf.mxu1 }
 0x177   : > { %vm1343_vm2 = vcmp.gt.f32.partialorder %v1202_v11, 0.0  ;;  %v1376_v13 = vmul.f32 %v3871_v24, %v1202_v11  ;;  %v1119_v59 = vpop.f32.mrf.mxu0  ;;  %v1176_v16 = vadd.f32 %v1175_v10, %v3858_v63  ;;  %v1147_v17 = vadd.f32 %v1146_v12, %v1118_v8 }
 0x178   : > { %v1120_v30 = vadd.f32 %v1119_v59, %v3878_v38 }
 0x179   : > { %v1408_v19 = vsel %vm1343_vm2, %v1202_v11, %v1376_v13  ;;  %v1379_v26 = vmul.f32 %v3871_v24, %v1147_v17  ;;  %vm1346_vm3 = vcmp.gt.f32.partialorder %v1147_v17, 0.0 }
 0x17a   : > { %v3906_v22 = vpack.c.bf16 %v1408_v19, %v1407_v18 }
 0x17b   : > { %v1411_v35 = vsel %vm1346_vm3, %v1147_v17, %v1379_v26 }
 0x17c   : > { %v1204_v23 = vpop.f32.mrf.mxu3  ;;  %1561 = vrot.lane.b32.xlu2 %v3906_v22, %s3406_s9  ;;  %1534 = vst [vmem:[#allocation2 + $0xb0] sm:$0xff] %v3906_v22 }
 0x17d   : > { %v1205_v28 = vadd.f32 %v1204_v23, %v1176_v16 }
 0x17e   : > { %v1177_v27 = vpop.f32.mrf.mxu2  ;;  %v1148_v29 = vpop.f32.mrf.mxu1 }
 0x17f   : > { %vm1347_vm6 = vcmp.gt.f32.partialorder %v1205_v28, 0.0  ;;  %v1380_v32 = vmul.f32 %v3871_v24, %v1205_v28  ;;  %v1122_v33 = vpop.f32.mrf.mxu0  ;;  %v1149_v34 = vadd.f32 %v1148_v29, %v1120_v30  ;;  %v1178_v40 = vadd.f32 %v1177_v27, %v3878_v38 }
 0x180   : > { %v1123_v46 = vadd.f32 %v1122_v33, %v3868_v20 }
 0x181   : > { %v1412_v36 = vsel %vm1347_vm6, %v1205_v28, %v1380_v32  ;;  %v1383_v42 = vmul.f32 %v3871_v24, %v1149_v34  ;;  %vm1350_vm7 = vcmp.gt.f32.partialorder %v1149_v34, 0.0 }
 0x182   : > { %v1435_v37 = vpack.c.bf16 %v1412_v36, %v1411_v35 }
 0x183   : > { %v1415_v50 = vsel %vm1350_vm7, %v1149_v34, %v1383_v42 }
 0x184   : > { %v1206_v41 = vpop.f32.mrf.mxu3  ;;  %1563 = vrot.lane.b32.xlu0 %v1435_v37, %s3406_s9  ;;  %1535 = vst [vmem:[#allocation2 + $0xc0] sm:$0xff] %v1435_v37  ;;  %1483 = vrot.lane.b32.xlu2 %v1435_v37, %s3407_s18 }
 0x185   : > { %v1207_v44 = vadd.f32 %v1206_v41, %v1178_v40 }
 0x186   : > { %v1180_v43 = vpop.f32.mrf.mxu2  ;;  %v1151_v45 = vpop.f32.mrf.mxu1 }
 0x187   : > { %vm1351_vm11 = vcmp.gt.f32.partialorder %v1207_v44, 0.0  ;;  %v1384_v47 = vmul.f32 %v3871_v24, %v1207_v44  ;;  %v1124_v48 = vpop.f32.mrf.mxu0  ;;  %v1152_v49 = vadd.f32 %v1151_v45, %v1123_v46  ;;  %v1181_v55 = vadd.f32 %v1180_v43, %v3868_v20 }
 0x188   : > { %v1125_v62 = vadd.f32 %v1124_v48, %v3860_v31 }
 0x189   : > { %v1416_v51 = vsel %vm1351_vm11, %v1207_v44, %v1384_v47  ;;  %v1387_v57 = vmul.f32 %v3871_v24, %v1152_v49  ;;  %vm1354_vm12 = vcmp.gt.f32.partialorder %v1152_v49, 0.0 }
 0x18a   : > { %v1437_v52 = vpack.c.bf16 %v1416_v51, %v1415_v50 }
 0x18b   : > { %v1419_v4 = vsel %vm1354_vm12, %v1152_v49, %v1387_v57 }
 0x18c   : > { %v1209_v56 = vpop.f32.mrf.mxu3  ;;  %1536 = vst [vmem:[#allocation2 + $0xd0] sm:$0xff] %v1437_v52  ;;  %1485 = vrot.lane.b32.xlu0 %v1437_v52, %s3407_s18  ;;  %1565 = vrot.lane.b32.xlu1 %v1437_v52, %s3406_s9 }
 0x18d   : > { %v1210_v60 = vadd.f32 %v1209_v56, %v1181_v55 }
 0x18e   : > { %v1182_v58 = vpop.f32.mrf.mxu2  ;;  %v1153_v61 = vpop.f32.mrf.mxu1 }
 0x18f   : > { %vm1355_vm13 = vcmp.gt.f32.partialorder %v1210_v60, 0.0  ;;  %v1388_v0 = vmul.f32 %v3871_v24, %v1210_v60  ;;  %v1281_v1 = vpop.f32.mrf.mxu0  ;;  %v1154_v3 = vadd.f32 %v1153_v61, %v1125_v62  ;;  %v1183_v8 = vadd.f32 %v1182_v58, %v3860_v31  ;;  %v2986_v58 = vld [vmem:[#allocation2 + $0xc0] sm:$0xf] }
 0x190   : > { %v1282_v11 = vadd.f32 %v1281_v1, %v3865_v15  ;;  %v3222_v1 = vld [vmem:[#allocation2 + $0xac] sm:$0xf0] }
 0x191   : > { %v1420_v6 = vsel %vm1355_vm13, %v1210_v60, %v1388_v0  ;;  %v1391_v10 = vmul.f32 %v3871_v24, %v1154_v3  ;;  %vm1358_vm14 = vcmp.gt.f32.partialorder %v1154_v3, 0.0  ;;  %v3224_v60 = vld [vmem:[#allocation2 + $0xc4] sm:$0xf] }
 0x192   : > { %v1439_v7 = vpack.c.bf16 %v1420_v6, %v1419_v4 }
 0x193   : > { %v1423_v19 = vsel %vm1358_vm14, %v1154_v3, %v1391_v10  ;;  %v2988_v52 = vld [vmem:[#allocation2 + $0xd0] sm:$0xf0] }
 0x194   : > { %v1211_v9 = vpop.f32.mrf.mxu3  ;;  %1537 = vst [vmem:[#allocation2 + $0xe0] sm:$0xff] %v1439_v7  ;;  %1567 = vrot.lane.b32.xlu2 %v1439_v7, %s3406_s9  ;;  %1487 = vrot.lane.b32.xlu1 %v1439_v7, %s3407_s18  ;;  %v2991_v62 = vor.u32 %v3224_v60, %v2988_v52  ;;  %v2972_v3 = vld [vmem:[#allocation2 + $0xb0] sm:$0xf0] }
 0x195   : > { %v1212_v12 = vadd.f32 %v1211_v9, %v1183_v8  ;;  %v2970_v8 = vld [vmem:[#allocation2 + $0xa0] sm:$0xf]  ;;  %v3220_v9 = vld [vmem:[#allocation2 + $0xa4] sm:$0xf] }
 0x196   : > { %v1310_v13 = vpop.f32.mrf.mxu2  ;;  %v1223_v59 = vpop.f32.mrf.mxu1 }
 0x197   : > { %vm1359_vm15 = vcmp.gt.f32.partialorder %v1212_v12, 0.0  ;;  %v1392_v16 = vmul.f32 %v3871_v24, %v1212_v12  ;;  %v1283_v17 = vpop.f32.mrf.mxu0  ;;  %v1311_v18 = vadd.f32 %v1310_v13, %v1282_v11  ;;  %v1224_v27 = vadd.f32 %v1223_v59, %v3865_v15 }
 0x198   : > { %v1284_v34 = vadd.f32 %v1283_v17, %v3873_v25  ;;  %v2971_v11 = vor.u32 %v3222_v1, %v2970_v8  ;;  %v3218_v17 = vld [vmem:[#allocation2 + $0x8c] sm:$0xf0] }
 0x199   : > { %v1424_v23 = vsel %vm1359_vm15, %v1212_v12, %v1392_v16  ;;  %v1366_v29 = vmul.f32 %v3871_v24, %v1311_v18  ;;  %vm1333_vm0 = vcmp.gt.f32.partialorder %v1311_v18, 0.0  ;;  %v2975_v12 = vor.u32 %v3220_v9, %v2972_v3 }
 0x19a   : > { %v1441_v26 = vpack.c.bf16 %v1424_v23, %v1423_v19 }
 0x19b   : > { %v1398_v40 = vsel %vm1333_vm0, %v1311_v18, %v1366_v29  ;;  %v3002_v41 = vld [vmem:[#allocation2 + $0xe0] sm:$0xf]  ;;  %v3228_v45 = vld [vmem:[#allocation2 + $0xe4] sm:$0xf]  ;;  %v2956_v18 = vld [vmem:[#allocation2 + $0x90] sm:$0xf0] }
 0x19c   : > { %v1252_v28 = vpop.f32.mrf.mxu3  ;;  %1538 = vst [vmem:[#allocation2 + $0xf0] sm:$0xff] %v1441_v26  ;;  %1569 = vrot.lane.b32.xlu0 %v1441_v26, %s3406_s9  ;;  %1489 = vrot.lane.b32.xlu2 %v1441_v26, %s3407_s18  ;;  %v2954_v26 = vld [vmem:[#allocation2 + $0x80] sm:$0xf] }
 0x19d   : > { %v1253_v30 = vadd.f32 %v1252_v28, %v1224_v27  ;;  %1481 = vrot.lane.b32.xlu1 %v3906_v22, %s3407_s18  ;;  %v3216_v27 = vld [vmem:[#allocation2 + $0x84] sm:$0xf]  ;;  %v2955_v28 = vor.u32 %v3218_v17, %v2954_v26 }
 0x19e   : > { %v1312_v32 = vpop.f32.mrf.mxu2  ;;  %v1225_v33 = vpop.f32.mrf.mxu1  ;;  %v2959_v29 = vor.u32 %v3216_v27, %v2956_v18 }
 0x19f   : > { %vm1332_vm1 = vcmp.gt.f32.partialorder %v1253_v30, 0.0  ;;  %v1365_v15 = vmul.f32 %v3871_v24, %v1253_v30  ;;  %v1286_v35 = vpop.f32.mrf.mxu0  ;;  %v1313_v36 = vadd.f32 %v1312_v32, %v1284_v34  ;;  %v1226_v43 = vadd.f32 %v1225_v33, %v3873_v25  ;;  %v3226_v25 = vld [vmem:[#allocation2 + $0xcc] sm:$0xf0] }
 0x1a0   : > { %v2987_v61 = vor.u32 %v3226_v25, %v2986_v58 }
 0x1a1   : > { %v1397_v37 = vsel %vm1332_vm1, %v1253_v30, %v1365_v15  ;;  %v1370_v49 = vmul.f32 %v3871_v24, %v1313_v36  ;;  %vm1337_vm2 = vcmp.gt.f32.partialorder %v1313_v36, 0.0 }
 0x1a2   : > { %v3940_v42 = vpack.c.bf16 %v1398_v40, %v1397_v37 }
 0x1a3   : > { %v3230_v44 = vld [vmem:[#allocation2 + $0xec] sm:$0xf0]  ;;  %v3004_v46 = vld [vmem:[#allocation2 + $0xf0] sm:$0xf0]  ;;  %v1402_v4 = vsel %vm1337_vm2, %v1313_v36, %v1370_v49 }
 0x1a4   : > { %v1254_v22 = vpop.f32.mrf.mxu3  ;;  %1479 = vrot.lane.b32.xlu0 %v3896_v5, %s3407_s18  ;;  %1555 = vrot.lane.b32.xlu2 %v3880_v39, %s3406_s9  ;;  %v3003_v47 = vor.u32 %v3230_v44, %v3002_v41  ;;  %v3007_v48 = vor.u32 %v3228_v45, %v3004_v46  ;;  %1675 = vst [vmem:[#allocation2 + $0x88] sm:$0xff] %v3940_v42 }
 0x1a5   : > { %v1255_v50 = vadd.f32 %v1254_v22, %v1226_v43  ;;  %1475 = vrot.lane.b32.xlu1 %v3880_v39, %s3407_s18  ;;  %v1287_v5 = vadd.f32 %v1286_v35, %v3863_v14 }
 0x1a6   : > { %v1315_v51 = vpop.f32.mrf.mxu2  ;;  %v1228_v55 = vpop.f32.mrf.mxu1  ;;  %2139 = vmatpush.bf16.msra.mxu1 %v3003_v47  ;;  %2197 = vmatpush.bf16.msra.mxu0 %v3007_v48 }
 0x1a7   : > { %vm1336_vm3 = vcmp.gt.f32.partialorder %v1255_v50, 0.0  ;;  %v1369_v56 = vmul.f32 %v3871_v24, %v1255_v50  ;;  %v1288_v57 = vpop.f32.mrf.mxu0  ;;  %v1316_v0 = vadd.f32 %v1315_v51, %v1287_v5  ;;  %v1229_v7 = vadd.f32 %v1228_v55, %v3863_v14 }
 0x1a8   : > { %v1289_v19 = vadd.f32 %v1288_v57, %v3890_v54 }
 0x1a9   : > { %v1401_v39 = vsel %vm1336_vm3, %v1255_v50, %v1369_v56  ;;  %v1374_v13 = vmul.f32 %v3871_v24, %v1316_v0  ;;  %vm1341_vm6 = vcmp.gt.f32.partialorder %v1316_v0, 0.0 }
 0x1aa   : > { %2140 = vmatpush.bf16.msra.mxu1 %v2987_v61  ;;  %2198 = vmatpush.bf16.msra.mxu0 %v2991_v62  ;;  %v3954_v6 = vpack.c.bf16 %v1402_v4, %v1401_v39 }
 0x1ab   : > { %v1406_v33 = vsel %vm1341_vm6, %v1316_v0, %v1374_v13 }
 0x1ac   : > { %v1257_v10 = vpop.f32.mrf.mxu3  ;;  %1557 = vrot.lane.b32.xlu0 %v3888_v53, %s3406_s9  ;;  %1477 = vrot.lane.b32.xlu2 %v3888_v53, %s3407_s18  ;;  %1676 = vst [vmem:[#allocation2 + $0x98] sm:$0xff] %v3954_v6 }
 0x1ad   : > { %v1258_v59 = vadd.f32 %v1257_v10, %v1229_v7 }
 0x1ae   : > { %v1317_v16 = vpop.f32.mrf.mxu2  ;;  %v1230_v14 = vpop.f32.mrf.mxu1  ;;  %2141 = vmatpush.bf16.msra.mxu1 %v2971_v11  ;;  %2199 = vmatpush.bf16.msra.mxu0 %v2975_v12 }
 0x1af   : > { %vm1340_vm7 = vcmp.gt.f32.partialorder %v1258_v59, 0.0  ;;  %v1373_v23 = vmul.f32 %v3871_v24, %v1258_v59  ;;  %v1291_v53 = vpop.f32.mrf.mxu0  ;;  %v1318_v30 = vadd.f32 %v1317_v16, %v1289_v19  ;;  %v1231_v15 = vadd.f32 %v1230_v14, %v3890_v54 }
 0x1b0   : > { %v1292_v43 = vadd.f32 %v1291_v53, %v3858_v63 }
 0x1b1   : > { %v1405_v32 = vsel %vm1340_vm7, %v1258_v59, %v1373_v23  ;;  %v1378_v36 = vmul.f32 %v3871_v24, %v1318_v30  ;;  %vm1345_vm11 = vcmp.gt.f32.partialorder %v1318_v30, 0.0 }
 0x1b2   : > { %2142 = vmatpush.bf16.msra.mxu1 %v2955_v28  ;;  %2200 = vmatpush.bf16.msra.mxu0 %v2959_v29  ;;  %v3965_v34 = vpack.c.bf16 %v1406_v33, %v1405_v32 }
 0x1b3   : > { %v1410_v22 = vsel %vm1345_vm11, %v1318_v30, %v1378_v36 }
 0x1b4   : > { %v1259_v35 = vpop.f32.mrf.mxu3  ;;  %1677 = vst [vmem:[#allocation2 + $0xa8] sm:$0xff] %v3965_v34  ;;  %1703 = vrot.lane.b32.xlu2 %v3965_v34, %s3406_s9 }
 0x1b5   : > { %v1260_v37 = vadd.f32 %v1259_v35, %v1231_v15 }
 0x1b6   : > { %v1320_v40 = vpop.f32.mrf.mxu2  ;;  %v1233_v41 = vpop.f32.mrf.mxu1 }
 0x1b7   : > { %vm1344_vm12 = vcmp.gt.f32.partialorder %v1260_v37, 0.0  ;;  %v1377_v44 = vmul.f32 %v3871_v24, %v1260_v37  ;;  %v1293_v45 = vpop.f32.mrf.mxu0  ;;  %v1321_v46 = vadd.f32 %v1320_v40, %v1292_v43  ;;  %v1234_v48 = vadd.f32 %v1233_v41, %v3858_v63 }
 0x1b8   : > { %v1294_v55 = vadd.f32 %v1293_v45, %v3878_v38 }
 0x1b9   : > { %v1409_v54 = vsel %vm1344_vm12, %v1260_v37, %v1377_v44  ;;  %v1382_v50 = vmul.f32 %v3871_v24, %v1321_v46  ;;  %vm1349_vm13 = vcmp.gt.f32.partialorder %v1321_v46, 0.0 }
 0x1ba   : > { %v3974_v47 = vpack.c.bf16 %v1410_v22, %v1409_v54  ;;  %v1805_v22 = vld [vmem:[%s4401_s5 + $0x10] sm:$0xff] }
 0x1bb   : > { %v1414_v63 = vsel %vm1349_vm13, %v1321_v46, %v1382_v50  ;;  %v1804_v46 = vld [vmem:[%s4401_s5 + $0x8] sm:$0xff] }
 0x1bc   : > { %v1262_v49 = vpop.f32.mrf.mxu3  ;;  %1678 = vst [vmem:[#allocation2 + $0xb8] sm:$0xff] %v3974_v47  ;;  %1705 = vrot.lane.b32.xlu0 %v3974_v47, %s3406_s9 }
 0x1bd   : > { %v1263_v51 = vadd.f32 %v1262_v49, %v1234_v48 }
 0x1be   : > { %v1322_v25 = vpop.f32.mrf.mxu2  ;;  %v1235_v52 = vpop.f32.mrf.mxu1 }
 0x1bf   : > { %vm1348_vm14 = vcmp.gt.f32.partialorder %v1263_v51, 0.0  ;;  %v1381_v5 = vmul.f32 %v3871_v24, %v1263_v51  ;;  %v1323_v56 = vadd.f32 %v1322_v25, %v1294_v55  ;;  %v1296_v58 = vpop.f32.mrf.mxu0  ;;  %v1236_v61 = vadd.f32 %v1235_v52, %v3878_v38  ;;  %v1808_v55 = vld [vmem:[%s4401_s5 + $0x28] sm:$0xff] }
 0x1c0   : > { %v1297_v4 = vadd.f32 %v1296_v58, %v3868_v20 }
 0x1c1   : > { %v1413_v57 = vsel %vm1348_vm14, %v1263_v51, %v1381_v5  ;;  %v1386_v0 = vmul.f32 %v3871_v24, %v1323_v56  ;;  %vm1353_vm15 = vcmp.gt.f32.partialorder %v1323_v56, 0.0  ;;  %v1806_v5 = vld [vmem:[%s4401_s5 + $0x18] sm:$0xff] }
 0x1c2   : > { %v1436_v60 = vpack.c.bf16 %v1414_v63, %v1413_v57 }
 0x1c3   : > { %v1418_v38 = vsel %vm1353_vm15, %v1323_v56, %v1386_v0  ;;  %v1810_v56 = vld [vmem:[%s4401_s5 + $0x38] sm:$0xff] }
 0x1c4   : > { %v1264_v62 = vpop.f32.mrf.mxu3  ;;  %1679 = vst [vmem:[#allocation2 + $0xc8] sm:$0xff] %v1436_v60  ;;  %1627 = vrot.lane.b32.xlu0 %v1436_v60, %s3407_s18  ;;  %1707 = vrot.lane.b32.xlu1 %v1436_v60, %s3406_s9 }
 0x1c5   : > { %v1265_v1 = vadd.f32 %v1264_v62, %v1236_v61 }
 0x1c6   : > { %v1325_v3 = vpop.f32.mrf.mxu2  ;;  %v1238_v39 = vpop.f32.mrf.mxu1 }
 0x1c7   : > { %vm1352_vm0 = vcmp.gt.f32.partialorder %v1265_v1, 0.0  ;;  %v1385_v7 = vmul.f32 %v3871_v24, %v1265_v1  ;;  %v1326_v8 = vadd.f32 %v1325_v3, %v1297_v4  ;;  %v1239_v11 = vadd.f32 %v1238_v39, %v3868_v20  ;;  %v1298_v12 = vpop.f32.mrf.mxu0  ;;  %v1809_v3 = vld [vmem:[%s4401_s5 + $0x30] sm:$0xff] }
 0x1c8   : > { %v1299_v18 = vadd.f32 %v1298_v12, %v3860_v31 }
 0x1c9   : > { %v1417_v9 = vsel %vm1352_vm0, %v1265_v1, %v1385_v7  ;;  %v1390_v59 = vmul.f32 %v3871_v24, %v1326_v8  ;;  %vm1357_vm1 = vcmp.gt.f32.partialorder %v1326_v8, 0.0 }
 0x1ca   : > { %v1438_v10 = vpack.c.bf16 %v1418_v38, %v1417_v9 }
 0x1cb   : > { %v1422_v53 = vsel %vm1357_vm1, %v1326_v8, %v1390_v59 }
 0x1cc   : > { %v1267_v13 = vpop.f32.mrf.mxu3  ;;  %1680 = vst [vmem:[#allocation2 + $0xd8] sm:$0xff] %v1438_v10  ;;  %1629 = vrot.lane.b32.xlu1 %v1438_v10, %s3407_s18  ;;  %1709 = vrot.lane.b32.xlu2 %v1438_v10, %s3406_s9 }
 0x1cd   : > { %v1268_v16 = vadd.f32 %v1267_v13, %v1239_v11 }
 0x1ce   : > { %v1327_v17 = vpop.f32.mrf.mxu2  ;;  %v1240_v19 = vpop.f32.mrf.mxu1 }
 0x1cf   : > { %vm1356_vm2 = vcmp.gt.f32.partialorder %v1268_v16, 0.0  ;;  %v1389_v14 = vmul.f32 %v3871_v24, %v1268_v16  ;;  %v1328_v23 = vadd.f32 %v1327_v17, %v1299_v18  ;;  %v1241_v27 = vadd.f32 %v1240_v19, %v3860_v31 }
 0x1d1   : > { %v1421_v20 = vsel %vm1356_vm2, %v1268_v16, %v1389_v14  ;;  %v1394_v29 = vmul.f32 %v3871_v24, %v1328_v23  ;;  %vm1361_vm3 = vcmp.gt.f32.partialorder %v1328_v23, 0.0 }
 0x1d2   : > { %v1440_v26 = vpack.c.bf16 %v1422_v53, %v1421_v20 }
 0x1d3   : > { %v1426_v37 = vsel %vm1361_vm3, %v1328_v23, %v1394_v29 }
 0x1d4   : > { %v1269_v28 = vpop.f32.mrf.mxu3  ;;  %1681 = vst [vmem:[#allocation2 + $0xe8] sm:$0xff] %v1440_v26  ;;  %1711 = vrot.lane.b32.xlu0 %v1440_v26, %s3406_s9  ;;  %1631 = vrot.lane.b32.xlu2 %v1440_v26, %s3407_s18 }
 0x1d5   : > { %v1270_v30 = vadd.f32 %v1269_v28, %v1241_v27 }
 0x1d6   : > { %v1562_v32 = vpop.permute.xlu2 %1561 }
 0x1d7   : > { %vm1360_vm6 = vcmp.gt.f32.partialorder %v1270_v30, 0.0  ;;  %v1393_v33 = vmul.f32 %v3871_v24, %v1270_v30  ;;  %v1574_v15 = vrot.slane %v1562_v32, 4 }
 0x1d9   : > { %v1582_v35 = vsel %vm484_vm8, %v1562_v32, %v1574_v15  ;;  %v1425_v36 = vsel %vm1360_vm6, %v1270_v30, %v1393_v33 }
 0x1da   : > { %1598 = vst.msk [vmem:[#allocation2 + $0x130] sm:$0xff] %vm3656_vm9, %v1582_v35  ;;  %v1442_v31 = vpack.c.bf16 %v1426_v37, %v1425_v36 }
 0x1dc   : > { %1682 = vst [vmem:[#allocation2 + $0xf8] sm:$0xff] %v1442_v31  ;;  %1633 = vrot.lane.b32.xlu0 %v1442_v31, %s3407_s18  ;;  %1713 = vrot.lane.b32.xlu1 %v1442_v31, %s3406_s9 }
 0x1dd   : > { %1625 = vrot.lane.b32.xlu2 %v3974_v47, %s3407_s18  ;;  %v1803_v47 = vld [vmem:[%s4401_s5] sm:$0xff] }
 0x1de   : > { %v1484_v40 = vpop.permute.xlu2 %1483 }
 0x1df   : > { %v1495_v41 = vrot.slane %v1484_v40, 4 }
 0x1e1   : > { %v1503_v24 = vsel %vm368_vm4, %v1495_v41, %v1484_v40 }
 0x1e2   : > { %1519 = vst.msk [vmem:[#allocation2 + $0x40] sm:$0xff] %vm3643_vm5, %v1503_v24 }
 0x1e4   : > { %1699 = vrot.lane.b32.xlu0 %v3940_v42, %s3406_s9  ;;  %1623 = vrot.lane.b32.xlu1 %v3965_v34, %s3407_s18 }
 0x1e5   : > { %1619 = vrot.lane.b32.xlu2 %v3940_v42, %s3407_s18 }
 0x1e6   : > { %v1560_v43 = vpop.permute.xlu1 %1559 }
 0x1e7   : > { %v1573_v44 = vrot.slane %v1560_v43, 4 }
 0x1e9   : > { %v1581_v45 = vsel %vm484_vm8, %v1560_v43, %v1573_v44  ;;  %v2922_v32 = vld [vmem:[#allocation2 + $0x40] sm:$0xf]  ;;  %v3208_v33 = vld [vmem:[#allocation2 + $0x44] sm:$0xf] }
 0x1ea   : > { %1597 = vst.msk [vmem:[#allocation2 + $0x120] sm:$0xff] %vm3656_vm9, %v1581_v45 }
 0x1ec   : > { %1621 = vrot.lane.b32.xlu0 %v3954_v6, %s3407_s18  ;;  %1701 = vrot.lane.b32.xlu1 %v3954_v6, %s3406_s9  ;;  %v1807_v6 = vld [vmem:[%s4401_s5 + $0x20] sm:$0xff] }
 0x1ed   : > { %1818 = vperm.xlu2 %3303, %v1804_v46  }
 0x1ee   : > { %v1568_v34 = vpop.permute.xlu2 %1567 }
 0x1ef   : > { %v1577_v42 = vrot.slane %v1568_v34, 4 }
 0x1f1   : > { %v1585_v54 = vsel %vm484_vm8, %v1568_v34, %v1577_v42 }
 0x1f2   : > { %1601 = vst.msk [vmem:[#allocation2 + $0x160] sm:$0xff] %vm3656_vm9, %v1585_v54 }
 0x1f4   : > { %1823 = vperm.xlu0 %3304, %v1805_v22   ;;  %1813 = vperm.xlu1 %3305, %v1803_v47  }
 0x1f5   : > { %1833 = vperm.xlu2 %3303, %v1807_v6  }
 0x1f6   : > { %v1564_v48 = vpop.permute.xlu0 %1563  ;;  %v1490_v49 = vpop.permute.xlu2 %1489 }
 0x1f7   : > { %v1575_v50 = vrot.slane %v1564_v48, 4  ;;  %v1498_v51 = vrot.slane %v1490_v49, 4 }
 0x1f9   : > { %v1583_v25 = vsel %vm484_vm8, %v1564_v48, %v1575_v50  ;;  %v1506_v52 = vsel %vm368_vm4, %v1498_v51, %v1490_v49  ;;  %v3066_v41 = vld [vmem:[#allocation2 + $0x160] sm:$0xf]  ;;  %v3244_v44 = vld [vmem:[#allocation2 + $0x164] sm:$0xf] }
 0x1fa   : > { %1599 = vst.msk [vmem:[#allocation2 + $0x140] sm:$0xff] %vm3656_vm9, %v1583_v25  ;;  %v3034_v25 = vld [vmem:[#allocation2 + $0x120] sm:$0xf] }
 0x1fb   : > { %1522 = vst.msk [vmem:[#allocation2 + $0x70] sm:$0xff] %vm3643_vm5, %v1506_v52 }
 0x1fc   : > { %1838 = vperm.xlu0 %3304, %v1808_v55   ;;  %1828 = vperm.xlu1 %3305, %v1806_v5   ;;  %v3238_v55 = vld [vmem:[#allocation2 + $0x12c] sm:$0xf0]  ;;  %v3236_v5 = vld [vmem:[#allocation2 + $0x124] sm:$0xf] }
 0x1fd   : > { %1848 = vperm.xlu2 %3303, %v1810_v56  }
 0x1fe   : > { %v1486_v57 = vpop.permute.xlu0 %1485  ;;  %v1566_v63 = vpop.permute.xlu1 %1565 }
 0x1ff   : > { %v1496_v58 = vrot.slane %v1486_v57, 4  ;;  %v1576_v60 = vrot.slane %v1566_v63, 4  ;;  %v1556_v61 = vpop.permute.xlu2 %1555 }
 0x200   : > { %v1571_v62 = vrot.slane %v1556_v61, 4 }
 0x201   : > { %v1504_v0 = vsel %vm368_vm4, %v1496_v58, %v1486_v57  ;;  %v1584_v1 = vsel %vm484_vm8, %v1566_v63, %v1576_v60  ;;  %v3050_v47 = vld [vmem:[#allocation2 + $0x140] sm:$0xf]  ;;  %v3240_v6 = vld [vmem:[#allocation2 + $0x144] sm:$0xf] }
 0x202   : > { %1520 = vst.msk [vmem:[#allocation2 + $0x50] sm:$0xff] %vm3643_vm5, %v1504_v0  ;;  %v1579_v39 = vsel %vm484_vm8, %v1556_v61, %v1571_v62  ;;  %v3214_v18 = vld [vmem:[#allocation2 + $0x6c] sm:$0xf0]  ;;  %v2940_v20 = vld [vmem:[#allocation2 + $0x70] sm:$0xf0]  ;;  %v3035_v61 = vor.u32 %v3238_v55, %v3034_v25 }
 0x203   : > { %1600 = vst.msk [vmem:[#allocation2 + $0x150] sm:$0xff] %vm3656_vm9, %v1584_v1  ;;  %v3036_v0 = vld [vmem:[#allocation2 + $0x130] sm:$0xf0]  ;;  %v3217_v25 = vld [vmem:[#allocation2 + $0x8c] sm:$0xf] }
 0x204   : > { %1595 = vst.msk [vmem:[#allocation2 + $0x100] sm:$0xff] %vm3656_vm9, %v1579_v39  ;;  %1843 = vperm.xlu1 %3305, %v1809_v3   ;;  %v3039_v1 = vor.u32 %v3236_v5, %v3036_v0  ;;  %v3231_v39 = vld [vmem:[#allocation2 + $0xf4] sm:$0xf0]  ;;  %v2866_v55 = vld [vmem:[%s4400_s4 + $0x10] sm:$0xf] }
 0x205   : > { %v3195_v5 = vld [vmem:[%s4400_s4 + $0x14] sm:$0xf0]  ;;  %v3194_v0 = vld [vmem:[%s4400_s4 + $0x14] sm:$0xf] }
 0x206   : > { %v1488_v4 = vpop.permute.xlu1 %1487 }
 0x207   : > { %v1497_v7 = vrot.slane %v1488_v4, 4  ;;  %v1478_v8 = vpop.permute.xlu2 %1477 }
 0x208   : > { %v1492_v9 = vrot.slane %v1478_v8, 4 }
 0x209   : > { %v1505_v38 = vsel %vm368_vm4, %v1497_v7, %v1488_v4  ;;  %v3210_v29 = vld [vmem:[#allocation2 + $0x4c] sm:$0xf0]  ;;  %v2924_v30 = vld [vmem:[#allocation2 + $0x50] sm:$0xf0]  ;;  %v2858_v7 = vld [vmem:[%s4400_s4] sm:$0xf] }
 0x20a   : > { %1521 = vst.msk [vmem:[#allocation2 + $0x60] sm:$0xff] %vm3643_vm5, %v1505_v38  ;;  %v1500_v10 = vsel %vm368_vm4, %v1492_v9, %v1478_v8  ;;  %v2923_v35 = vor.u32 %v3210_v29, %v2922_v32  ;;  %v2927_v36 = vor.u32 %v3208_v33, %v2924_v30  ;;  %v3242_v54 = vld [vmem:[#allocation2 + $0x14c] sm:$0xf0]  ;;  %v3052_v22 = vld [vmem:[#allocation2 + $0x150] sm:$0xf0] }
 0x20b   : > { %1516 = vst.msk [vmem:[#allocation2 + $0x10] sm:$0xff] %vm3643_vm5, %v1500_v10  ;;  %v3051_v49 = vor.u32 %v3242_v54, %v3050_v47  ;;  %v3055_v50 = vor.u32 %v3240_v6, %v3052_v22  ;;  %v3193_v8 = vld [vmem:[%s4400_s4 + $0x4] sm:$0xf0]  ;;  %v3012_v38 = vld [vmem:[#allocation2 + $0xf8] sm:$0xf0] }
 0x20c   : > { %v3232_v30 = vld [vmem:[#allocation2 + $0x104] sm:$0xf]  ;;  %v3221_v54 = vld [vmem:[#allocation2 + $0xac] sm:$0xf]  ;;  %v3219_v47 = vld [vmem:[#allocation2 + $0x94] sm:$0xf0] }
 0x20e   : > { %v1570_v11 = vpop.permute.xlu0 %1569 }
 0x20f   : > { %v1578_v12 = vrot.slane %v1570_v11, 4  ;;  %v1482_v13 = vpop.permute.xlu1 %1481  ;;  %v1704_v59 = vpop.permute.xlu2 %1703 }
 0x210   : > { %v1494_v16 = vrot.slane %v1482_v13, 4  ;;  %v1717_v17 = vrot.slane %v1704_v59, 4 }
 0x211   : > { %v1586_v14 = vsel %vm484_vm8, %v1570_v11, %v1578_v12  ;;  %v2938_v19 = vld [vmem:[#allocation2 + $0x60] sm:$0xf]  ;;  %v3212_v23 = vld [vmem:[#allocation2 + $0x64] sm:$0xf] }
 0x212   : > { %1602 = vst.msk [vmem:[#allocation2 + $0x170] sm:$0xff] %vm3656_vm9, %v1586_v14  ;;  %v1502_v53 = vsel %vm368_vm4, %v1494_v16, %v1482_v13  ;;  %v1725_v26 = vsel %vm484_vm8, %v1704_v59, %v1717_v17  ;;  %v2939_v27 = vor.u32 %v3214_v18, %v2938_v19  ;;  %v2943_v28 = vor.u32 %v3212_v23, %v2940_v20  ;;  %v3202_v9 = vld [vmem:[#allocation2 + $0xc] sm:$0xf0]  ;;  %v2892_v12 = vld [vmem:[#allocation2 + $0x10] sm:$0xf0] }
 0x213   : > { %1518 = vst.msk [vmem:[#allocation2 + $0x30] sm:$0xff] %vm3643_vm5, %v1502_v53  ;;  %v3010_v13 = vld [vmem:[#allocation2 + $0xe8] sm:$0xf]  ;;  %v3227_v59 = vld [vmem:[#allocation2 + $0xd4] sm:$0xf0]  ;;  %v4095_v19 = vor.u32 %v3193_v8, %v2858_v7 }
 0x214   : > { %1741 = vst.msk [vmem:[#allocation2 + $0x128] sm:$0xff] %vm3656_vm9, %v1725_v26  ;;  %2143 = vmatpush.bf16.msra.mxu1 %v2939_v27  ;;  %2201 = vmatpush.bf16.msra.mxu0 %v2943_v28  ;;  %v3011_v18 = vor.u32 %v3231_v39, %v3010_v13  ;;  %v3229_v14 = vld [vmem:[#allocation2 + $0xec] sm:$0xf]  ;;  %v2996_v23 = vld [vmem:[#allocation2 + $0xd8] sm:$0xf0] }
 0x215   : > { %v3015_v20 = vor.u32 %v3229_v14, %v3012_v38  ;;  %v3018_v53 = vld [vmem:[#allocation2 + $0x100] sm:$0xf]  ;;  %v3192_v26 = vld [vmem:[%s4400_s4 + $0x4] sm:$0xf]  ;;  %v2860_v27 = vld [vmem:[%s4400_s4 + $0x8] sm:$0xf0] }
 0x216   : > { %v1480_v15 = vpop.permute.xlu0 %1479  ;;  %v2874_v13 = vld [vmem:[%s4400_s4 + $0x20] sm:$0xf]  ;;  %v3196_v14 = vld [vmem:[%s4400_s4 + $0x24] sm:$0xf] }
 0x217   : > { %v1493_v37 = vrot.slane %v1480_v15, 4  ;;  %v1476_v31 = vpop.permute.xlu1 %1475 }
 0x218   : > { %v1491_v40 = vrot.slane %v1476_v31, 4  ;;  %2144 = vmatpush.bf16.msra.mxu1 %v2923_v35  ;;  %2202 = vmatpush.bf16.msra.mxu0 %v2927_v36  ;;  %v2994_v35 = vld [vmem:[#allocation2 + $0xc8] sm:$0xf] }
 0x219   : > { %v1501_v24 = vsel %vm368_vm4, %v1493_v37, %v1480_v15  ;;  %v3246_v43 = vld [vmem:[#allocation2 + $0x16c] sm:$0xf0]  ;;  %v3068_v45 = vld [vmem:[#allocation2 + $0x170] sm:$0xf0]  ;;  %v2995_v36 = vor.u32 %v3227_v59, %v2994_v35  ;;  %v3225_v37 = vld [vmem:[#allocation2 + $0xcc] sm:$0xf] }
 0x21a   : > { %1517 = vst.msk [vmem:[#allocation2 + $0x20] sm:$0xff] %vm3643_vm5, %v1501_v24  ;;  %v1499_v46 = vsel %vm368_vm4, %v1491_v40, %v1476_v31  ;;  %v3067_v34 = vor.u32 %v3246_v43, %v3066_v41  ;;  %v3071_v42 = vor.u32 %v3244_v44, %v3068_v45  ;;  %v3206_v52 = vld [vmem:[#allocation2 + $0x2c] sm:$0xf0]  ;;  %v2908_v58 = vld [vmem:[#allocation2 + $0x30] sm:$0xf0]  ;;  %v4107_v31 = vor.u32 %v3192_v26, %v2860_v27 }
 0x21b   : > { %1515 = vst.msk [vmem:[#allocation2] sm:$0xff] %vm3643_vm5, %v1499_v46  ;;  %v2999_v40 = vor.u32 %v3225_v37, %v2996_v23  ;;  %v3223_v41 = vld [vmem:[#allocation2 + $0xb4] sm:$0xf0]  ;;  %v2980_v24 = vld [vmem:[#allocation2 + $0xb8] sm:$0xf0] }
 0x21c   : > { %2172 = vmatpush.bf16.msra.mxu3 %v3067_v34  ;;  %2230 = vmatpush.bf16.msra.mxu2 %v3071_v42  ;;  %v2978_v45 = vld [vmem:[#allocation2 + $0xa8] sm:$0xf]  ;;  %v2983_v22 = vor.u32 %v3221_v54, %v2980_v24  ;;  %v2876_v23 = vld [vmem:[%s4400_s4 + $0x28] sm:$0xf0] }
 0x21d   : > { %v2979_v42 = vor.u32 %v3223_v41, %v2978_v45  ;;  %v3197_v59 = vld [vmem:[%s4400_s4 + $0x24] sm:$0xf0]  ;;  %v3198_v45 = vld [vmem:[%s4400_s4 + $0x34] sm:$0xf] }
 0x21e   : > { %v1558_v48 = vpop.permute.xlu0 %1557 }
 0x21f   : > { %v1572_v51 = vrot.slane %v1558_v48, 4 }
 0x220   : > { %2173 = vmatpush.bf16.msra.mxu3 %v3051_v49  ;;  %2231 = vmatpush.bf16.msra.mxu2 %v3055_v50  ;;  %v2964_v49 = vld [vmem:[#allocation2 + $0x98] sm:$0xf0]  ;;  %v2962_v50 = vld [vmem:[#allocation2 + $0x88] sm:$0xf] }
 0x221   : > { %v1580_v56 = vsel %vm484_vm8, %v1558_v48, %v1572_v51  ;;  %v2906_v57 = vld [vmem:[#allocation2 + $0x20] sm:$0xf]  ;;  %v3204_v63 = vld [vmem:[#allocation2 + $0x24] sm:$0xf]  ;;  %v2963_v51 = vor.u32 %v3219_v47, %v2962_v50 }
 0x222   : > { %1596 = vst.msk [vmem:[#allocation2 + $0x110] sm:$0xff] %vm3656_vm9, %v1580_v56  ;;  %v2907_v60 = vor.u32 %v3206_v52, %v2906_v57  ;;  %v2911_v62 = vor.u32 %v3204_v63, %v2908_v58  ;;  %v2890_v3 = vld [vmem:[#allocation2] sm:$0xf]  ;;  %v3200_v4 = vld [vmem:[#allocation2 + $0x4] sm:$0xf]  ;;  %v2967_v52 = vor.u32 %v3217_v25, %v2964_v49 }
 0x223   : > { %v2891_v11 = vor.u32 %v3202_v9, %v2890_v3  ;;  %v2895_v17 = vor.u32 %v3200_v4, %v2892_v12 }
 0x224   : > { %2145 = vmatpush.bf16.msra.mxu1 %v2907_v60  ;;  %2174 = vmatpush.bf16.msra.mxu3 %v3035_v61  ;;  %v4126_v61 = vor.u32 %v3195_v5, %v2866_v55 }
 0x225   : > { %2203 = vmatpush.bf16.msra.mxu0 %v2911_v62  ;;  %2232 = vmatpush.bf16.msra.mxu2 %v3039_v1  ;;  %v2868_v1 = vld [vmem:[%s4400_s4 + $0x18] sm:$0xf0] }
 0x226   : > { %v1710_v10 = vpop.permute.xlu2 %1709  ;;  %v4142_v7 = vor.u32 %v3194_v0, %v2868_v1 }
 0x227   : > { %v1720_v16 = vrot.slane %v1710_v10, 4 }
 0x228   : > { %2146 = vmatpush.bf16.msra.mxu1 %v2891_v11 }
 0x229   : > { %v1728_v28 = vsel %vm484_vm8, %v1710_v10, %v1720_v16  ;;  %2204 = vmatpush.bf16.msra.mxu0 %v2895_v17  ;;  %v3234_v29 = vld [vmem:[#allocation2 + $0x10c] sm:$0xf0]  ;;  %v3020_v32 = vld [vmem:[#allocation2 + $0x110] sm:$0xf0] }
 0x22a   : > { %1744 = vst.msk [vmem:[#allocation2 + $0x158] sm:$0xff] %vm3656_vm9, %v1728_v28  ;;  %v3019_v33 = vor.u32 %v3234_v29, %v3018_v53  ;;  %v3023_v15 = vor.u32 %v3232_v30, %v3020_v32  ;;  %v4175_v53 = vor.u32 %v3196_v14, %v2876_v23 }
 0x22b   : > { %2147 = vmatmul.bf16.vlgmr.msra.gmra.mxu1 %v4095_v19 }
 0x22c   : > { %2255 = vmatpush.bf16.msrb.mxu1 %v3011_v18  ;;  %2205 = vmatmul.bf16.vlgmr.msra.gmra.mxu0 %v4095_v19  ;;  %v4163_v18 = vor.u32 %v3197_v59, %v2874_v13 }
 0x22d   : > { %2313 = vmatpush.bf16.msrb.mxu0 %v3015_v20  ;;  %2175 = vmatpush.bf16.msra.mxu3 %v3019_v33  ;;  %v2882_v33 = vld [vmem:[%s4400_s4 + $0x30] sm:$0xf] }
 0x22e   : > { %2233 = vmatpush.bf16.msra.mxu2 %v3023_v15  ;;  %v1706_v43 = vpop.permute.xlu0 %1705  ;;  %v1632_v44 = vpop.permute.xlu2 %1631  ;;  %v3199_v15 = vld [vmem:[%s4400_s4 + $0x34] sm:$0xf0] }
 0x22f   : > { %v1718_v46 = vrot.slane %v1706_v43, 4  ;;  %v1641_v34 = vrot.slane %v1632_v44, 4  ;;  %v4194_v41 = vor.u32 %v3199_v15, %v2882_v33 }
 0x230   : > { %2256 = vmatpush.bf16.msrb.mxu1 %v2995_v36  ;;  %3080 = vmatmul.msk.bf16.vlgmr.msra.gmra.mxu3 %vm1085_vm10, %v4107_v31 }
 0x231   : > { %2314 = vmatpush.bf16.msrb.mxu0 %v2999_v40  ;;  %3084 = vmatmul.msk.bf16.vlgmr.msra.gmra.mxu2 %vm1085_vm10, %v4107_v31  ;;  %v1726_v6 = vsel %vm484_vm8, %v1706_v43, %v1718_v46  ;;  %v1649_v48 = vsel %vm368_vm4, %v1641_v34, %v1632_v44  ;;  %v2884_v46 = vld [vmem:[%s4400_s4 + $0x38] sm:$0xf0]  ;;  %v3243_v0 = vld [vmem:[#allocation2 + $0x154] sm:$0xf0] }
 0x232   : > { %1742 = vst.msk [vmem:[#allocation2 + $0x138] sm:$0xff] %vm3656_vm9, %v1726_v6 }
 0x233   : > { %1665 = vst.msk [vmem:[#allocation2 + $0x68] sm:$0xff] %vm3643_vm5, %v1649_v48 }
 0x234   : > { %2257 = vmatpush.bf16.msrb.mxu1 %v2979_v42 }
 0x235   : > { %2315 = vmatpush.bf16.msrb.mxu0 %v2983_v22 }
 0x236   : > { %v1628_v56 = vpop.permute.xlu0 %1627  ;;  %v1708_v57 = vpop.permute.xlu1 %1707 }
 0x237   : > { %v1639_v63 = vrot.slane %v1628_v56, 4  ;;  %v1719_v58 = vrot.slane %v1708_v57, 4  ;;  %v1626_v60 = vpop.permute.xlu2 %1625 }
 0x238   : > { %2258 = vmatpush.bf16.msrb.mxu1 %v2963_v51  ;;  %v1638_v62 = vrot.slane %v1626_v60, 4 }
 0x239   : > { %2316 = vmatpush.bf16.msrb.mxu0 %v2967_v52  ;;  %v1647_v3 = vsel %vm368_vm4, %v1639_v63, %v1628_v56  ;;  %v1727_v39 = vsel %vm484_vm8, %v1708_v57, %v1719_v58  ;;  %v4209_v52 = vor.u32 %v3198_v45, %v2884_v46  ;;  %v2371_v46 = vld [vmem:[%s3541_s29] sm:$0xff] }
 0x23a   : > { %1663 = vst.msk [vmem:[#allocation2 + $0x48] sm:$0xff] %vm3643_vm5, %v1647_v3  ;;  %v1646_v4 = vsel %vm368_vm4, %v1638_v62, %v1626_v60  ;;  %v2946_v24 = vld [vmem:[#allocation2 + $0x68] sm:$0xf]  ;;  %v3213_v43 = vld [vmem:[#allocation2 + $0x6c] sm:$0xf] }
 0x23b   : > { %1743 = vst.msk [vmem:[#allocation2 + $0x148] sm:$0xff] %vm3656_vm9, %v1727_v39  ;;  %2152 = vmatmul.bf16.gmra.mxu1 %v4126_v61 }
 0x23c   : > { %1662 = vst.msk [vmem:[#allocation2 + $0x38] sm:$0xff] %vm3643_vm5, %v1646_v4  ;;  %2210 = vmatmul.bf16.gmra.mxu0 %v4126_v61 }
 0x23e   : > { %v1630_v8 = vpop.permute.xlu1 %1629 }
 0x23f   : > { %v1640_v9 = vrot.slane %v1630_v8, 4  ;;  %v1620_v38 = vpop.permute.xlu2 %1619 }
 0x240   : > { %3081 = vmatmul.msk.bf16.gmra.mxu3 %vm1085_vm10, %v4142_v7  ;;  %v1635_v10 = vrot.slane %v1620_v38, 4 }
 0x241   : > { %3085 = vmatmul.msk.bf16.gmra.mxu2 %vm1085_vm10, %v4142_v7  ;;  %v1648_v11 = vsel %vm368_vm4, %v1640_v9, %v1630_v8  ;;  %v2930_v57 = vld [vmem:[#allocation2 + $0x48] sm:$0xf]  ;;  %v3209_v1 = vld [vmem:[#allocation2 + $0x4c] sm:$0xf]  ;;  %v3060_v9 = vld [vmem:[#allocation2 + $0x158] sm:$0xf0] }
 0x242   : > { %1664 = vst.msk [vmem:[#allocation2 + $0x58] sm:$0xff] %vm3643_vm5, %v1648_v11  ;;  %v1643_v12 = vsel %vm368_vm4, %v1635_v10, %v1620_v38  ;;  %v3058_v5 = vld [vmem:[#allocation2 + $0x148] sm:$0xf]  ;;  %v3241_v63 = vld [vmem:[#allocation2 + $0x14c] sm:$0xf] }
 0x243   : > { %1659 = vst.msk [vmem:[#allocation2 + $0x8] sm:$0xff] %vm3643_vm5, %v1643_v12  ;;  %v3059_v4 = vor.u32 %v3243_v0, %v3058_v5  ;;  %v3063_v38 = vor.u32 %v3241_v63, %v3060_v9  ;;  %v3042_v10 = vld [vmem:[#allocation2 + $0x128] sm:$0xf]  ;;  %v3239_v11 = vld [vmem:[#allocation2 + $0x134] sm:$0xf0] }
 0x244   : > { %v3207_v59 = vld [vmem:[#allocation2 + $0x34] sm:$0xf0] }
 0x246   : > { %v1712_v16 = vpop.permute.xlu0 %1711 }
 0x247   : > { %v1721_v17 = vrot.slane %v1712_v16, 4 }
 0x249   : > { %v1729_v20 = vsel %vm484_vm8, %v1712_v16, %v1721_v17  ;;  %v3211_v55 = vld [vmem:[#allocation2 + $0x54] sm:$0xf0]  ;;  %v2932_v56 = vld [vmem:[#allocation2 + $0x58] sm:$0xf0] }
 0x24a   : > { %1745 = vst.msk [vmem:[#allocation2 + $0x168] sm:$0xff] %vm3656_vm9, %v1729_v20  ;;  %v2931_v62 = vor.u32 %v3211_v55, %v2930_v57  ;;  %v2935_v8 = vor.u32 %v3209_v1, %v2932_v56  ;;  %v2916_v16 = vld [vmem:[#allocation2 + $0x38] sm:$0xf0] }
 0x24b   : > { %2157 = vmatmul.bf16.gmra.mxu1 %v4163_v18  ;;  %v3044_v17 = vld [vmem:[#allocation2 + $0x138] sm:$0xf0] }
 0x24c   : > { %2215 = vmatmul.bf16.gmra.mxu0 %v4163_v18  ;;  %v2374_v56 = vld [vmem:[%s3541_s29 + $0x18] sm:$0xff] }
 0x24e   : > { %v1634_v26 = vpop.permute.xlu0 %1633  ;;  %v1714_v27 = vpop.permute.xlu1 %1713 }
 0x24f   : > { %v1642_v28 = vrot.slane %v1634_v26, 4  ;;  %v1722_v29 = vrot.slane %v1714_v27, 4 }
 0x250   : > { %3082 = vmatmul.msk.bf16.gmra.mxu3 %vm1085_vm10, %v4175_v53 }
 0x251   : > { %3086 = vmatmul.msk.bf16.gmra.mxu2 %vm1085_vm10, %v4175_v53  ;;  %v1650_v30 = vsel %vm368_vm4, %v1642_v28, %v1634_v26  ;;  %v1730_v32 = vsel %vm484_vm8, %v1714_v27, %v1722_v29  ;;  %v3074_v44 = vld [vmem:[#allocation2 + $0x168] sm:$0xf]  ;;  %v3245_v47 = vld [vmem:[#allocation2 + $0x16c] sm:$0xf]  ;;  %v3043_v26 = vor.u32 %v3239_v11, %v3042_v10 }
 0x252   : > { %1666 = vst.msk [vmem:[#allocation2 + $0x78] sm:$0xff] %vm3643_vm5, %v1650_v30  ;;  %v3237_v28 = vld [vmem:[#allocation2 + $0x12c] sm:$0xf]  ;;  %v2898_v30 = vld [vmem:[#allocation2 + $0x8] sm:$0xf] }
 0x253   : > { %1746 = vst.msk [vmem:[#allocation2 + $0x178] sm:$0xff] %vm3656_vm9, %v1730_v32  ;;  %v3047_v29 = vor.u32 %v3237_v28, %v3044_v17  ;;  %v3201_v32 = vld [vmem:[#allocation2 + $0xc] sm:$0xf]  ;;  %v2378_v28 = vld [vmem:[%s3541_s29 + $0x38] sm:$0xff] }
 0x256   : > { %v1700_v35 = vpop.permute.xlu0 %1699  ;;  %v1624_v36 = vpop.permute.xlu1 %1623 }
 0x257   : > { %v1715_v37 = vrot.slane %v1700_v35, 4  ;;  %v1637_v40 = vrot.slane %v1624_v36, 4 }
 0x259   : > { %v1723_v34 = vsel %vm484_vm8, %v1700_v35, %v1715_v37  ;;  %v1645_v42 = vsel %vm368_vm4, %v1637_v40, %v1624_v36  ;;  %v3215_v54 = vld [vmem:[#allocation2 + $0x74] sm:$0xf0]  ;;  %v2948_v22 = vld [vmem:[#allocation2 + $0x78] sm:$0xf0] }
 0x25a   : > { %1739 = vst.msk [vmem:[#allocation2 + $0x108] sm:$0xff] %vm3656_vm9, %v1723_v34  ;;  %v2947_v6 = vor.u32 %v3215_v54, %v2946_v24  ;;  %v3247_v48 = vld [vmem:[#allocation2 + $0x174] sm:$0xf0]  ;;  %v2951_v49 = vor.u32 %v3213_v43, %v2948_v22  ;;  %v3076_v50 = vld [vmem:[#allocation2 + $0x178] sm:$0xf0] }
 0x25b   : > { %1661 = vst.msk [vmem:[#allocation2 + $0x28] sm:$0xff] %vm3643_vm5, %v1645_v42  ;;  %2162 = vmatmul.bf16.gmra.mxu1 %v4194_v41  ;;  %v3075_v51 = vor.u32 %v3247_v48, %v3074_v44  ;;  %v3079_v25 = vor.u32 %v3245_v47, %v3076_v50  ;;  %v2372_v42 = vld [vmem:[%s3541_s29 + $0x8] sm:$0xff] }
 0x25c   : > { %2220 = vmatmul.bf16.gmra.mxu0 %v4194_v41  ;;  %2259 = vmatpush.bf16.msrb.mxu1 %v2947_v6  ;;  %v4257_v6 = vpop.permute.xlu2 %1818 }
 0x25d   : > { %2288 = vmatpush.bf16.msrb.mxu3 %v3075_v51  ;;  %2317 = vmatpush.bf16.msrb.mxu0 %v2951_v49 }
 0x25e   : > { %2346 = vmatpush.bf16.msrb.mxu2 %v3079_v25  ;;  %v1622_v58 = vpop.permute.xlu0 %1621  ;;  %v1702_v60 = vpop.permute.xlu1 %1701 }
 0x25f   : > { %v1636_v3 = vrot.slane %v1622_v58, 4  ;;  %v1716_v39 = vrot.slane %v1702_v60, 4 }
 0x260   : > { %3083 = vmatmul.msk.bf16.gmra.mxu3 %vm1085_vm10, %v4209_v52  ;;  %2260 = vmatpush.bf16.msrb.mxu1 %v2931_v62 }
 0x261   : > { %3087 = vmatmul.msk.bf16.gmra.mxu2 %vm1085_vm10, %v4209_v52  ;;  %v1644_v12 = vsel %vm368_vm4, %v1636_v3, %v1622_v58  ;;  %v1724_v13 = vsel %vm484_vm8, %v1702_v60, %v1716_v39  ;;  %2289 = vmatpush.bf16.msrb.mxu3 %v3059_v4  ;;  %v3026_v2 = vld [vmem:[#allocation2 + $0x108] sm:$0xf]  ;;  %v3233_v40 = vld [vmem:[#allocation2 + $0x10c] sm:$0xf]  ;;  %v2375_v4 = vld [vmem:[%s3541_s29 + $0x20] sm:$0xff] }
 0x262   : > { %2318 = vmatpush.bf16.msrb.mxu0 %v2935_v8  ;;  %1660 = vst.msk [vmem:[#allocation2 + $0x18] sm:$0xff] %vm3643_vm5, %v1644_v12  ;;  %2347 = vmatpush.bf16.msrb.mxu2 %v3063_v38  ;;  %v2914_v14 = vld [vmem:[#allocation2 + $0x28] sm:$0xf]  ;;  %v3205_v23 = vld [vmem:[#allocation2 + $0x2c] sm:$0xf] }
 0x263   : > { %1740 = vst.msk [vmem:[#allocation2 + $0x118] sm:$0xff] %vm3656_vm9, %v1724_v13  ;;  %v2915_v20 = vor.u32 %v3207_v59, %v2914_v14  ;;  %v2919_v27 = vor.u32 %v3205_v23, %v2916_v16  ;;  %v2376_v38 = vld [vmem:[%s3541_s29 + $0x28] sm:$0xff] }
 0x265   : > { %2261 = vmatpush.bf16.msrb.mxu1 %v2915_v20  ;;  %2290 = vmatpush.bf16.msrb.mxu3 %v3043_v26  ;;  %v2377_v20 = vld [vmem:[%s3541_s29 + $0x30] sm:$0xff] }
 0x266   : > { %2319 = vmatpush.bf16.msrb.mxu0 %v2919_v27  ;;  %2348 = vmatpush.bf16.msrb.mxu2 %v3047_v29  ;;  %v4265_v60 = vpop.permute.xlu0 %1823 }
 0x269   : > { %v3203_v33 = vld [vmem:[#allocation2 + $0x14] sm:$0xf0]  ;;  %v2900_v15 = vld [vmem:[#allocation2 + $0x18] sm:$0xf0] }
 0x26a   : > { %v2899_v35 = vor.u32 %v3203_v33, %v2898_v30  ;;  %v3235_v36 = vld [vmem:[#allocation2 + $0x114] sm:$0xf0]  ;;  %v2903_v37 = vor.u32 %v3201_v32, %v2900_v15  ;;  %v3028_v21 = vld [vmem:[#allocation2 + $0x118] sm:$0xf0]  ;;  %v4281_v33 = vpop.permute.xlu2 %1833 }
 0x26b   : > { %v3027_v24 = vor.u32 %v3235_v36, %v3026_v2  ;;  %v3031_v43 = vor.u32 %v3233_v40, %v3028_v21  ;;  %v2379_v40 = vld [vmem:[%s3541_s29 + $0x40] sm:$0xff] }
 0x26c   : > { %2262 = vmatpush.bf16.msrb.mxu1 %v2899_v35  ;;  %2320 = vmatpush.bf16.msrb.mxu0 %v2903_v37 }
 0x26d   : > { %2291 = vmatpush.bf16.msrb.mxu3 %v3027_v24  ;;  %2349 = vmatpush.bf16.msrb.mxu2 %v3031_v43  ;;  %v2380_v43 = vld [vmem:[%s3541_s29 + $0x48] sm:$0xff] }
 0x26f   : > { %2263 = vmatmul.bf16.vlgmr.msrb.gmra.mxu1 %v4095_v19  ;;  %2321 = vmatmul.bf16.vlgmr.msrb.gmra.mxu0 %v4095_v19 }
 0x270   : > { %3088 = vmatmul.msk.bf16.vlgmr.msrb.gmra.mxu3 %vm1085_vm10, %v4107_v31 }
 0x271   : > { %3092 = vmatmul.msk.bf16.vlgmr.msrb.gmra.mxu2 %vm1085_vm10, %v4107_v31 }
 0x27f   : > { %2268 = vmatmul.bf16.gmra.mxu1 %v4126_v61  ;;  %2326 = vmatmul.bf16.gmra.mxu0 %v4126_v61  ;;  %v4246_v61 = vpop.permute.xlu1 %1813 }
 0x280   : > { %3089 = vmatmul.msk.bf16.gmra.mxu3 %vm1085_vm10, %v4142_v7 }
 0x281   : > { %3093 = vmatmul.msk.bf16.gmra.mxu2 %vm1085_vm10, %v4142_v7 }
 0x287   : > { %v4273_v13 = vpop.permute.xlu1 %1828 }
 0x28f   : > { %2273 = vmatmul.bf16.gmra.mxu1 %v4163_v18  ;;  %2331 = vmatmul.bf16.gmra.mxu0 %v4163_v18 }
 0x290   : > { %3090 = vmatmul.msk.bf16.gmra.mxu3 %vm1085_vm10, %v4175_v53 }
 0x291   : > { %3094 = vmatmul.msk.bf16.gmra.mxu2 %vm1085_vm10, %v4175_v53 }
 0x29f   : > { %2278 = vmatmul.bf16.gmra.mxu1 %v4194_v41  ;;  %2336 = vmatmul.bf16.gmra.mxu0 %v4194_v41 }
 0x2a0   : > { %3091 = vmatmul.msk.bf16.gmra.mxu3 %vm1085_vm10, %v4209_v52 }
 0x2a1   : > { %3095 = vmatmul.msk.bf16.gmra.mxu2 %vm1085_vm10, %v4209_v52  ;;  %v2373_v52 = vld [vmem:[%s3541_s29 + $0x10] sm:$0xff] }
 0x2a8   : > { %v2148_v19 = vpop.f32.mrf.mxu1 }
 0x2a9   : > { %v2206_v31 = vpop.f32.mrf.mxu0  ;;  %v2149_v18 = vadd.f32 %v2148_v19, %v4246_v61 }
 0x2aa   : > { %v2207_v44 = vadd.f32 %v2206_v31, %v4246_v61 }
 0x2b0   : > { %v2150_v7 = vpop.f32.mrf.mxu1 }
 0x2b1   : > { %v2208_v53 = vpop.f32.mrf.mxu0  ;;  %v2151_v49 = vadd.f32 %v2150_v7, %v4257_v6 }
 0x2b2   : > { %v2209_v51 = vadd.f32 %v2208_v53, %v4257_v6 }
 0x2b3   : > { %v2177_v45 = vpop.f32.mrf.mxu3 }
 0x2b4   : > { %v2178_v41 = vadd.f32 %v2177_v45, %v2149_v18  ;;  %v2235_v34 = vpop.f32.mrf.mxu2  ;;  %v4289_v18 = vpop.permute.xlu0 %1838 }
 0x2b5   : > { %v2236_v54 = vadd.f32 %v2235_v34, %v2207_v44  ;;  %v2381_v34 = vld [vmem:[%s3541_s29 + $0x50] sm:$0xff] }
 0x2b6   : > { %v2387_v22 = vadd.f32 %v2371_v46, %v2178_v41 }
 0x2b7   : > { %v2388_v47 = vadd.f32 %v2372_v42, %v2236_v54 }
 0x2b8   : > { %2403 = vst [vmem:[%s4254_s21] sm:$0xff] %v2387_v22  ;;  %v2153_v48 = vpop.f32.mrf.mxu1  ;;  %v2382_v22 = vld [vmem:[%s3541_s29 + $0x58] sm:$0xff] }
 0x2b9   : > { %2404 = vst [vmem:[%s4254_s21 + $0x8] sm:$0xff] %v2388_v47  ;;  %v2211_v50 = vpop.f32.mrf.mxu0  ;;  %v2154_v0 = vadd.f32 %v2153_v48, %v4265_v60 }
 0x2ba   : > { %v2212_v3 = vadd.f32 %v2211_v50, %v4265_v60  ;;  %v4297_v50 = vpop.permute.xlu1 %1843 }
 0x2bb   : > { %v2179_v25 = vpop.f32.mrf.mxu3 }
 0x2bc   : > { %v2180_v55 = vadd.f32 %v2179_v25, %v2151_v49  ;;  %v2237_v5 = vpop.f32.mrf.mxu2 }
 0x2bd   : > { %v2238_v57 = vadd.f32 %v2237_v5, %v2209_v51 }
 0x2be   : > { %v2389_v63 = vadd.f32 %v2373_v52, %v2180_v55  ;;  %v2383_v55 = vld [vmem:[%s3541_s29 + $0x60] sm:$0xff] }
 0x2bf   : > { %v2390_v58 = vadd.f32 %v2374_v56, %v2238_v57  ;;  %v2384_v57 = vld [vmem:[%s3541_s29 + $0x68] sm:$0xff] }
 0x2c0   : > { %2405 = vst [vmem:[%s4254_s21 + $0x10] sm:$0xff] %v2389_v63  ;;  %v2155_v62 = vpop.f32.mrf.mxu1 }
 0x2c1   : > { %2406 = vst [vmem:[%s4254_s21 + $0x18] sm:$0xff] %v2390_v58  ;;  %v2213_v1 = vpop.f32.mrf.mxu0  ;;  %v2156_v16 = vadd.f32 %v2155_v62, %v4273_v13 }
 0x2c2   : > { %v2214_v14 = vadd.f32 %v2213_v1, %v4273_v13 }
 0x2c3   : > { %v2182_v39 = vpop.f32.mrf.mxu3 }
 0x2c4   : > { %v2183_v8 = vadd.f32 %v2182_v39, %v2154_v0  ;;  %v2240_v9 = vpop.f32.mrf.mxu2 }
 0x2c5   : > { %v2241_v10 = vadd.f32 %v2240_v9, %v2212_v3  ;;  %v4305_v3 = vpop.permute.xlu2 %1848  ;;  %v2385_v9 = vld [vmem:[%s3541_s29 + $0x70] sm:$0xff] }
 0x2c6   : > { %v2391_v11 = vadd.f32 %v2375_v4, %v2183_v8 }
 0x2c7   : > { %v2392_v12 = vadd.f32 %v2376_v38, %v2241_v10 }
 0x2c8   : > { %2407 = vst [vmem:[%s4254_s21 + $0x20] sm:$0xff] %v2391_v11  ;;  %v2158_v59 = vpop.f32.mrf.mxu1  ;;  %v2386_v11 = vld [vmem:[%s3541_s29 + $0x78] sm:$0xff] }
 0x2c9   : > { %2408 = vst [vmem:[%s4254_s21 + $0x28] sm:$0xff] %v2392_v12  ;;  %v2216_v17 = vpop.f32.mrf.mxu0  ;;  %v2159_v15 = vadd.f32 %v2158_v59, %v4281_v33 }
 0x2ca   : > { %v2217_v36 = vadd.f32 %v2216_v17, %v4281_v33 }
 0x2cb   : > { %v2184_v23 = vpop.f32.mrf.mxu3 }
 0x2cc   : > { %v2185_v26 = vadd.f32 %v2184_v23, %v2156_v16  ;;  %v2242_v27 = vpop.f32.mrf.mxu2 }
 0x2cd   : > { %v2243_v29 = vadd.f32 %v2242_v27, %v2214_v14  ;;  %v3096_v27 = vld [vmem:[%s3541_s29 + $0x80] sm:$0xff] }
 0x2ce   : > { %v2393_v30 = vadd.f32 %v2377_v20, %v2185_v26 }
 0x2cf   : > { %v2394_v32 = vadd.f32 %v2378_v28, %v2243_v29  ;;  %v3097_v29 = vld [vmem:[%s3541_s29 + $0x88] sm:$0xff] }
 0x2d0   : > { %2409 = vst [vmem:[%s4254_s21 + $0x30] sm:$0xff] %v2393_v30  ;;  %v2160_v2 = vpop.f32.mrf.mxu1 }
 0x2d1   : > { %2410 = vst [vmem:[%s4254_s21 + $0x38] sm:$0xff] %v2394_v32  ;;  %v2218_v35 = vpop.f32.mrf.mxu0  ;;  %v2161_v53 = vadd.f32 %v2160_v2, %v4289_v18 }
 0x2d2   : > { %v2219_v45 = vadd.f32 %v2218_v35, %v4289_v18 }
 0x2d3   : > { %v2187_v37 = vpop.f32.mrf.mxu3 }
 0x2d4   : > { %v2188_v21 = vadd.f32 %v2187_v37, %v2159_v15  ;;  %v2245_v24 = vpop.f32.mrf.mxu2 }
 0x2d5   : > { %v2246_v19 = vadd.f32 %v2245_v24, %v2217_v36 }
 0x2d6   : > { %v2395_v31 = vadd.f32 %v2379_v40, %v2188_v21  ;;  %v3098_v21 = vld [vmem:[%s3541_s29 + $0x90] sm:$0xff] }
 0x2d7   : > { %v2396_v7 = vadd.f32 %v2380_v43, %v2246_v19  ;;  %v3099_v43 = vld [vmem:[%s3541_s29 + $0x98] sm:$0xff] }
 0x2d8   : > { %2411 = vst [vmem:[%s4254_s21 + $0x40] sm:$0xff] %v2395_v31  ;;  %v2163_v44 = vpop.f32.mrf.mxu1 }
 0x2d9   : > { %2412 = vst [vmem:[%s4254_s21 + $0x48] sm:$0xff] %v2396_v7  ;;  %v2221_v46 = vpop.f32.mrf.mxu0  ;;  %v2164_v51 = vadd.f32 %v2163_v44, %v4297_v50 }
 0x2da   : > { %v2222_v25 = vadd.f32 %v2221_v46, %v4297_v50 }
 0x2db   : > { %v2189_v41 = vpop.f32.mrf.mxu3 }
 0x2dc   : > { %v2190_v42 = vadd.f32 %v2189_v41, %v2161_v53  ;;  %v2247_v54 = vpop.f32.mrf.mxu2 }
 0x2dd   : > { %v2248_v47 = vadd.f32 %v2247_v54, %v2219_v45  ;;  %v3101_v54 = vld [vmem:[%s3541_s29 + $0xa8] sm:$0xff] }
 0x2de   : > { %v2397_v48 = vadd.f32 %v2381_v34, %v2190_v42  ;;  %v3100_v34 = vld [vmem:[%s3541_s29 + $0xa0] sm:$0xff] }
 0x2df   : > { %v2398_v49 = vadd.f32 %v2382_v22, %v2248_v47 }
 0x2e0   : > { %2413 = vst [vmem:[%s4254_s21 + $0x50] sm:$0xff] %v2397_v48  ;;  %v2165_v63 = vpop.f32.mrf.mxu1 }
 0x2e1   : > { %2414 = vst [vmem:[%s4254_s21 + $0x58] sm:$0xff] %v2398_v49  ;;  %v2223_v58 = vpop.f32.mrf.mxu0  ;;  %v2166_v39 = vadd.f32 %v2165_v63, %v4305_v3 }
 0x2e2   : > { %v2224_v4 = vadd.f32 %v2223_v58, %v4305_v3 }
 0x2e3   : > { %v2192_v52 = vpop.f32.mrf.mxu3 }
 0x2e4   : > { %v2193_v5 = vadd.f32 %v2192_v52, %v2164_v51  ;;  %v2250_v56 = vpop.f32.mrf.mxu2 }
 0x2e5   : > { %v2251_v62 = vadd.f32 %v2250_v56, %v2222_v25 }
 0x2e6   : > { %v2399_v0 = vadd.f32 %v2383_v55, %v2193_v5  ;;  %v3102_v5 = vld [vmem:[%s3541_s29 + $0xb0] sm:$0xff] }
 0x2e7   : > { %v2400_v1 = vadd.f32 %v2384_v57, %v2251_v62  ;;  %v3103_v57 = vld [vmem:[%s3541_s29 + $0xb8] sm:$0xff] }
 0x2e8   : > { %2415 = vst [vmem:[%s4254_s21 + $0x60] sm:$0xff] %v2399_v0 }
 0x2e9   : > { %2416 = vst [vmem:[%s4254_s21 + $0x68] sm:$0xff] %v2400_v1 }
 0x2eb   : > { %v2194_v8 = vpop.f32.mrf.mxu3 }
 0x2ec   : > { %v2195_v38 = vadd.f32 %v2194_v8, %v2166_v39  ;;  %v2252_v10 = vpop.f32.mrf.mxu2  ;;  %v2264_v59 = vpop.f32.mrf.mxu1 }
 0x2ed   : > { %v2253_v12 = vadd.f32 %v2252_v10, %v2224_v4  ;;  %v2322_v16 = vpop.f32.mrf.mxu0  ;;  %v2265_v23 = vadd.f32 %v2264_v59, %v4246_v61  ;;  %v3105_v10 = vld [vmem:[%s3541_s29 + $0xc8] sm:$0xff] }
 0x2ee   : > { %v2401_v17 = vadd.f32 %v2385_v9, %v2195_v38  ;;  %v2323_v20 = vadd.f32 %v2322_v16, %v4246_v61  ;;  %v3104_v9 = vld [vmem:[%s3541_s29 + $0xc0] sm:$0xff] }
 0x2ef   : > { %v2402_v14 = vadd.f32 %v2386_v11, %v2253_v12 }
 0x2f0   : > { %2417 = vst [vmem:[%s4254_s21 + $0x70] sm:$0xff] %v2401_v17 }
 0x2f1   : > { %2418 = vst [vmem:[%s4254_s21 + $0x78] sm:$0xff] %v2402_v14 }
 0x2f3   : > { %v2293_v26 = vpop.f32.mrf.mxu3 }
 0x2f4   : > { %v2351_v28 = vpop.f32.mrf.mxu2  ;;  %v2294_v30 = vadd.f32 %v2293_v26, %v2265_v23  ;;  %v2266_v2 = vpop.f32.mrf.mxu1  ;;  %v3106_v26 = vld [vmem:[%s3541_s29 + $0xd0] sm:$0xff] }
 0x2f5   : > { %v2352_v32 = vadd.f32 %v2351_v28, %v2323_v20  ;;  %v2324_v15 = vpop.f32.mrf.mxu0  ;;  %v2267_v37 = vadd.f32 %v2266_v2, %v4257_v6  ;;  %v3107_v28 = vld [vmem:[%s3541_s29 + $0xd8] sm:$0xff] }
 0x2f6   : > { %v2435_v35 = vadd.f32 %v3096_v27, %v2294_v30  ;;  %v2325_v61 = vadd.f32 %v2324_v15, %v4257_v6 }
 0x2f7   : > { %v2436_v36 = vadd.f32 %v3097_v29, %v2352_v32 }
 0x2f8   : > { %3112 = vst [vmem:[%s4254_s21 + $0x80] sm:$0xff] %v2435_v35 }
 0x2f9   : > { %3113 = vst [vmem:[%s4254_s21 + $0x88] sm:$0xff] %v2436_v36 }
 0x2fb   : > { %v2295_v40 = vpop.f32.mrf.mxu3 }
 0x2fc   : > { %v2353_v24 = vpop.f32.mrf.mxu2  ;;  %v2296_v19 = vadd.f32 %v2295_v40, %v2267_v37  ;;  %v2269_v7 = vpop.f32.mrf.mxu1 }
 0x2fd   : > { %v2354_v31 = vadd.f32 %v2353_v24, %v2325_v61  ;;  %v2327_v53 = vpop.f32.mrf.mxu0  ;;  %v2270_v46 = vadd.f32 %v2269_v7, %v4265_v60  ;;  %v3108_v61 = vld [vmem:[%s3541_s29 + $0xe0] sm:$0xff] }
 0x2fe   : > { %v2437_v44 = vadd.f32 %v3098_v21, %v2296_v19  ;;  %v2328_v6 = vadd.f32 %v2327_v53, %v4265_v60  ;;  %v3109_v21 = vld [vmem:[%s3541_s29 + $0xe8] sm:$0xff] }
 0x2ff   : > { %v2438_v45 = vadd.f32 %v3099_v43, %v2354_v31 }
 0x300   : > { %3114 = vst [vmem:[%s4254_s21 + $0x90] sm:$0xff] %v2437_v44 }
 0x301   : > { %3115 = vst [vmem:[%s4254_s21 + $0x98] sm:$0xff] %v2438_v45 }
 0x303   : > { %v2298_v41 = vpop.f32.mrf.mxu3 }
 0x304   : > { %v2356_v42 = vpop.f32.mrf.mxu2  ;;  %v2299_v22 = vadd.f32 %v2298_v41, %v2270_v46  ;;  %v2271_v48 = vpop.f32.mrf.mxu1  ;;  %v3110_v46 = vld [vmem:[%s3541_s29 + $0xf0] sm:$0xff]  ;;  %v3111_v41 = vld [vmem:[%s3541_s29 + $0xf8] sm:$0xff] }
 0x305   : > { %v2357_v47 = vadd.f32 %v2356_v42, %v2328_v6  ;;  %v2329_v49 = vpop.f32.mrf.mxu0  ;;  %v2272_v52 = vadd.f32 %v2271_v48, %v4273_v13 }
 0x306   : > { %v2439_v51 = vadd.f32 %v3100_v34, %v2299_v22  ;;  %v2330_v60 = vadd.f32 %v2329_v49, %v4273_v13 }
 0x307   : > { %v2440_v25 = vadd.f32 %v3101_v54, %v2357_v47 }
 0x308   : > { %3116 = vst [vmem:[%s4254_s21 + $0xa0] sm:$0xff] %v2439_v51 }
 0x309   : > { %3117 = vst [vmem:[%s4254_s21 + $0xa8] sm:$0xff] %v2440_v25 }
 0x30b   : > { %v2300_v55 = vpop.f32.mrf.mxu3 }
 0x30c   : > { %v2358_v56 = vpop.f32.mrf.mxu2  ;;  %v2301_v63 = vadd.f32 %v2300_v55, %v2272_v52  ;;  %v2274_v62 = vpop.f32.mrf.mxu1 }
 0x30d   : > { %v2359_v58 = vadd.f32 %v2358_v56, %v2330_v60  ;;  %v2332_v0 = vpop.f32.mrf.mxu0  ;;  %v2275_v4 = vadd.f32 %v2274_v62, %v4281_v33 }
 0x30e   : > { %v2441_v1 = vadd.f32 %v3102_v5, %v2301_v63  ;;  %v2333_v13 = vadd.f32 %v2332_v0, %v4281_v33 }
 0x30f   : > { %v2442_v39 = vadd.f32 %v3103_v57, %v2359_v58 }
 0x310   : > { %3118 = vst [vmem:[%s4254_s21 + $0xb0] sm:$0xff] %v2441_v1 }
 0x311   : > { %3119 = vst [vmem:[%s4254_s21 + $0xb8] sm:$0xff] %v2442_v39 }
 0x313   : > { %v2303_v8 = vpop.f32.mrf.mxu3 }
 0x314   : > { %v2361_v38 = vpop.f32.mrf.mxu2  ;;  %v2304_v11 = vadd.f32 %v2303_v8, %v2275_v4  ;;  %v2276_v59 = vpop.f32.mrf.mxu1 }
 0x315   : > { %v2362_v12 = vadd.f32 %v2361_v38, %v2333_v13  ;;  %v2334_v16 = vpop.f32.mrf.mxu0  ;;  %v2277_v23 = vadd.f32 %v2276_v59, %v4289_v18 }
 0x316   : > { %v2443_v17 = vadd.f32 %v3104_v9, %v2304_v11  ;;  %v2335_v33 = vadd.f32 %v2334_v16, %v4289_v18 }
 0x317   : > { %v2444_v14 = vadd.f32 %v3105_v10, %v2362_v12 }
 0x318   : > { %3120 = vst [vmem:[%s4254_s21 + $0xc0] sm:$0xff] %v2443_v17 }
 0x319   : > { %3121 = vst [vmem:[%s4254_s21 + $0xc8] sm:$0xff] %v2444_v14 }
 0x31b   : > { %v2305_v20 = vpop.f32.mrf.mxu3 }
 0x31c   : > { %v2363_v27 = vpop.f32.mrf.mxu2  ;;  %v2306_v29 = vadd.f32 %v2305_v20, %v2277_v23  ;;  %v2279_v32 = vpop.f32.mrf.mxu1 }
 0x31d   : > { %v2364_v30 = vadd.f32 %v2363_v27, %v2335_v33  ;;  %v2337_v2 = vpop.f32.mrf.mxu0  ;;  %v2280_v36 = vadd.f32 %v2279_v32, %v4297_v50 }
 0x31e   : > { %v2445_v15 = vadd.f32 %v3106_v26, %v2306_v29  ;;  %v2338_v18 = vadd.f32 %v2337_v2, %v4297_v50 }
 0x31f   : > { %v2446_v35 = vadd.f32 %v3107_v28, %v2364_v30 }
 0x320   : > { %3122 = vst [vmem:[%s4254_s21 + $0xd0] sm:$0xff] %v2445_v15 }
 0x321   : > { %3123 = vst [vmem:[%s4254_s21 + $0xd8] sm:$0xff] %v2446_v35 }
 0x323   : > { %v2308_v37 = vpop.f32.mrf.mxu3 }
 0x324   : > { %v2366_v40 = vpop.f32.mrf.mxu2  ;;  %v2309_v24 = vadd.f32 %v2308_v37, %v2280_v36  ;;  %v2281_v7 = vpop.f32.mrf.mxu1 }
 0x325   : > { %v2367_v43 = vadd.f32 %v2366_v40, %v2338_v18  ;;  %v2339_v53 = vpop.f32.mrf.mxu0  ;;  %v2282_v50 = vadd.f32 %v2281_v7, %v4305_v3 }
 0x326   : > { %v2447_v19 = vadd.f32 %v3108_v61, %v2309_v24  ;;  %v2340_v44 = vadd.f32 %v2339_v53, %v4305_v3 }
 0x327   : > { %v2448_v31 = vadd.f32 %v3109_v21, %v2367_v43 }
 0x328   : > { %3124 = vst [vmem:[%s4254_s21 + $0xe0] sm:$0xff] %v2447_v19 }
 0x329   : > { %3125 = vst [vmem:[%s4254_s21 + $0xe8] sm:$0xff] %v2448_v31 }
 0x32b   : > { %v2310_v45 = vpop.f32.mrf.mxu3 }
 0x32c   : > { %v2368_v6 = vpop.f32.mrf.mxu2  ;;  %v2311_v34 = vadd.f32 %v2310_v45, %v2282_v50 }
 0x32d   : > { %v2369_v42 = vadd.f32 %v2368_v6, %v2340_v44 }
 0x32e   : > { %v2449_v54 = vadd.f32 %v3110_v46, %v2311_v34 }
 0x32f   : > { %v2450_v22 = vadd.f32 %v3111_v41, %v2369_v42 }
 0x330   : > { %3126 = vst [vmem:[%s4254_s21 + $0xf0] sm:$0xff] %v2449_v54 }
 0x331   : > { %3127 = vst [vmem:[%s4254_s21 + $0xf8] sm:$0xff] %v2450_v22 }
 0x332   : > { %3363 = shalt.err (!%p3360_p4)
}
 0x333   : > { %s3409_s17 = smov 256   ;;  %s3410_s9 = smov 16  }
 0x334   : > { %3252 = dma.vmem_to_hbm [thread:$0]  (%p3499_p11), %s2483_s3, 4096, %s2485_s8, %s2469_s14, %s3409_s17, %s3409_s17, %s3410_s9  }
 0x335 PF: > { %s2499_s21 = sand.u32 1, %s3390_s23   ;;  %p4412_p7 = scmp.ge.s32.totalorder %s3402_s26, 2 }
 0x336   : > { %s2500_s19 = scalar_lea.sflag [#allocation7], %s2499_s21 }
 0x337   : > { %p3259_p5 = pnand %p4412_p7, %p3503_p12 }
 0x339   : > { %p3260_p8 = pneg %p3259_p5 }
 0x33b   : > { %3385 = dma.done.wait (%p3260_p8), %s2500_s19, 4096  }
 0x33c   : > { %3387 = vsyncadd (%p3260_p8), %s2500_s19, 4294963200  ;;  %p20_p10 = scmp.ge.s32.totalorder %s3474_s28, 4   ;;  %s4413_s23 = smov %s3394_s24 }
 0x33d   : > { %s4414_s24 = smov %s3398_s25  ;;  %s4415_s25 = smov %s3486_s7 }
 0x33e   : > { %s4416_s26 = smov %s3474_s28  ;;  %22 = sbr.rel (!%p20_p10) target bundleno = 7 (0x7), region = 91 }
 0x343   :  { %2506 = vsyncpa [#allocation6], 1 }
 0x344   :  { %2508 = vsyncpa [#allocation6 + $0x1], 1 }
 0x345   :  { %2509 = vsyncpa [#allocation7], 1 }
 0x346   :  { %2511 = vsyncpa [#allocation7 + $0x1], 1 }

</bundles_post_ra>
